<compile_context>
chip_gen: v7x
topology: tpu7x:2x2x1
jax: 0.10.0
libtpu: 0.0.40
codegen_flags: <defaults>
</compile_context>

<pallas_src>
import functools

import jax
import jax.numpy as jnp
from jax import lax
from jax.experimental import pallas as pl
from jax.experimental.pallas import tpu as pltpu


# ----------------------------------------------------------------------------
# Compiler params: per-chip VMEM budget + megacore-friendly grid semantics.
# ----------------------------------------------------------------------------
def _vmem_limit_bytes():
    try:
        cap = pltpu.get_tpu_info().vmem_capacity_bytes     # 64 MiB v7x, 128 MiB v5e/v6e
        return int(min(cap * 3 // 4, 100 * 1024 * 1024))
    except Exception:  # pragma: no cover - older/odd runtimes
        return 32 * 1024 * 1024


def _compiler_params():
    return pltpu.CompilerParams(
        dimension_semantics=("parallel",),
        vmem_limit_bytes=_vmem_limit_bytes(),
    )


def _pick_batches_per_step(b, lq, lk, target_rows=512):
    """Batch elements per grid step: fill MXU M, keep >=2 steps for megacore."""
    best = 1
    for nb in range(1, b + 1):
        if b % nb:
            continue
        if nb * max(lq, lk) > target_rows:
            continue
        if b >= 2 and b // nb < 2:
            continue
        best = nb
    return best


# ----------------------------------------------------------------------------
# Shared fused core: head-view gather, attention, context scatter, final
# linear + residual + LayerNorm.  All intermediates stay in VMEM.
# ----------------------------------------------------------------------------
def _attention_final_layernorm(x_res, q_s, q_off, k_s, k_off, v_s, v_off,
                               wf_ref, bf_ref, g_ref, be_ref, out_ref, attn_ref,
                               qt_s, kt_s, vt_s, ch_s, c3_s, *,
                               nb, H, lq, lk, md, d, eps):
    rq = lq // H
    rk = lk // H
    for bb in range(nb):
        q_row0 = bb * lq
        k_row0 = bb * lk
        for h in range(H):
            # Gather SAKT's head view (.view(B*H, -1, d)) into lane-dense (L, d)
            # scratch.  Rows are kept in "block order" (grouped by the sub-row
            # index h1) so only plain static VMEM-ref slices are needed; softmax
            # and the context matmul are invariant to this row/col permutation.
            for h1 in range(H):
                qt_s[h1 * rq:(h1 + 1) * rq, :] = q_s[
                    q_row0 + h * rq: q_row0 + (h + 1) * rq,
                    q_off + h1 * d: q_off + (h1 + 1) * d]
                kt_s[h1 * rk:(h1 + 1) * rk, :] = k_s[
                    k_row0 + h * rk: k_row0 + (h + 1) * rk,
                    k_off + h1 * d: k_off + (h1 + 1) * d]
                vt_s[h1 * rk:(h1 + 1) * rk, :] = v_s[
                    k_row0 + h * rk: k_row0 + (h + 1) * rk,
                    v_off + h1 * d: v_off + (h1 + 1) * d]

            # Scores: contraction on the last dim of both operands (no k.T
            # materialization); bf16 MXU operands, f32 accumulation.
            s = lax.dot_general(
                qt_s[...].astype(jnp.bfloat16), kt_s[...].astype(jnp.bfloat16),
                (((1,), (1,)), ((), ())), preferred_element_type=jnp.float32)
            # TODO(synk): attn_mask (masked_fill_ with -inf) not plumbed; the
            # module is exercised with attn_mask=None here.
            m = jnp.max(s, axis=-1, keepdims=True)
            e = jnp.exp(s - m)
            p = e / jnp.sum(e, axis=-1, keepdims=True)   # exact softmax (probs returned)

            ch_s[...] = jnp.dot(p.astype(jnp.bfloat16),
                                vt_s[...].astype(jnp.bfloat16),
                                preferred_element_type=jnp.float32)

            # Scatter context back into the lane-dense (rows, md) slab that
            # feeds the final linear (== torch .view(B, -1, H*d)).
            for h1 in range(H):
                c3_s[q_row0 + h * rq: q_row0 + (h + 1) * rq,
                     h1 * d:(h1 + 1) * d] = ch_s[h1 * rq:(h1 + 1) * rq, :]

            if attn_ref is not None:
                # Stored in block order; un-permuted outside the kernel.
                attn_ref[bb * H + h] = p

    # Fused final linear + residual add (dropout p=0.0 -> identity) + LayerNorm.
    proj = jnp.dot(c3_s[...].astype(jnp.bfloat16), wf_ref[...],
                   preferred_element_type=jnp.float32) + bf_ref[...]
    y = x_res + proj
    inv_n = 1.0 / md
    mean = jnp.sum(y, axis=-1, keepdims=True) * inv_n
    ex2 = jnp.sum(y * y, axis=-1, keepdims=True) * inv_n   # independent reductions
    var = ex2 - mean * mean
    out_ref[...] = (y - mean) * lax.rsqrt(var + eps) * g_ref[...] + be_ref[...]


# ----------------------------------------------------------------------------
# Kernel bodies: self-attention (fused QKV weight, single input stream) and the
# general cross-attention path.
# ----------------------------------------------------------------------------
def _fused_self_attention_kernel(x_ref, wqkv_ref, bqkv_ref, wf_ref, bf_ref,
                                 g_ref, be_ref, out_ref, *rest,
                                 nb, H, lq, lk, md, d, eps, return_attention):
    if return_attention:
        attn_ref = rest[0]
        proj_s, qt_s, kt_s, vt_s, ch_s, c3_s = rest[1:]
    else:
        attn_ref = None
        proj_s, qt_s, kt_s, vt_s, ch_s, c3_s = rest

    x = x_ref[...]                                  # residual (f32)
    proj_s[...] = (jnp.dot(x.astype(jnp.bfloat16), wqkv_ref[...],
                           preferred_element_type=jnp.float32) + bqkv_ref[...])
    _attention_final_layernorm(
        x, proj_s, 0, proj_s, md, proj_s, 2 * md,
        wf_ref, bf_ref, g_ref, be_ref, out_ref, attn_ref,
        qt_s, kt_s, vt_s, ch_s, c3_s,
        nb=nb, H=H, lq=lq, lk=lk, md=md, d=d, eps=eps)


def _fused_cross_attention_kernel(xq_ref, xk_ref, xv_ref, wq_ref, wk_ref, wv_ref,
                                  bq_ref, bk_ref, bv_ref, wf_ref, bf_ref, g_ref,
                                  be_ref, out_ref, *rest,
                                  nb, H, lq, lk, md, d, eps, return_attention):
    if return_attention:
        attn_ref = rest[0]
        rest = rest[1:]
    else:
        attn_ref = None
    qp_s, kp_s, vp_s, qt_s, kt_s, vt_s, ch_s, c3_s = rest

    xq = xq_ref[...]                                # residual (f32)
    qp_s[...] = jnp.dot(xq.astype(jnp.bfloat16), wq_ref[...],
                        preferred_element_type=jnp.float32) + bq_ref[...]
    kp_s[...] = jnp.dot(xk_ref[...].astype(jnp.bfloat16), wk_ref[...],
                        preferred_element_type=jnp.float32) + bk_ref[...]
    vp_s[...] = jnp.dot(xv_ref[...].astype(jnp.bfloat16), wv_ref[...],
                        preferred_element_type=jnp.float32) + bv_ref[...]
    _attention_final_layernorm(
        xq, qp_s, 0, kp_s, 0, vp_s, 0,
        wf_ref, bf_ref, g_ref, be_ref, out_ref, attn_ref,
        qt_s, kt_s, vt_s, ch_s, c3_s,
        nb=nb, H=H, lq=lq, lk=lk, md=md, d=d, eps=eps)


def _unscramble_attention(p_blk, H, lq, lk):
    """Undo the in-kernel block-order row/col permutation (metadata + one copy)."""
    bh = p_blk.shape[0]
    rq, rk = lq // H, lk // H
    return (p_blk.reshape(bh, H, rq, H, rk)
            .transpose(0, 2, 1, 4, 3)
            .reshape(bh, lq, lk))


# ----------------------------------------------------------------------------
# Module wrapper (single pallas_call).
# ----------------------------------------------------------------------------
def multi_head_attention(q, k, v, params, num_heads, return_attention=True,
                         attn_mask=None, eps=1e-5):
    if attn_mask is not None:
        # TODO(synk): attn_mask (masked_fill_ with -inf) not implemented.
        raise NotImplementedError("attn_mask is not supported by this kernel")

    b, lq, md = q.shape
    lk = k.shape[1]
    H = num_heads
    d = md // H
    assert md % H == 0
    # TODO(synk): the in-kernel head gather assumes seq_len % num_heads == 0
    # (PyTorch's .view has no such restriction).
    assert lq % H == 0 and lk % H == 0

    # NOTE: SAKT scales by the *input* k's model_dim (k.size(-1)), NOT
    # dim_per_head — intentionally non-standard, matches the PyTorch module.
    scale = float(k.shape[-1]) ** (-0.5)
    self_attn = (q is k) and (k is v)

    nb = _pick_batches_per_step(b, lq, lk)
    grid = (b // nb,)

    # Fold the softmax scale into the Q projection (applied pre-bf16-rounding).
    wq_s = params["wq"] * scale
    bq_s = params["bq"] * scale
    wf_b = params["wf"].astype(jnp.bfloat16)
    bf_r = params["bf"].reshape(1, md)
    g_r = params["ln_gamma"].reshape(1, md)
    be_r = params["ln_beta"].reshape(1, md)

    def resident(rows, cols):
        return pl.BlockSpec((rows, cols), lambda i: (0, 0))

    out2_struct = jax.ShapeDtypeStruct((b * lq, md), jnp.float32)
    out2_spec = pl.BlockSpec((nb * lq, md), lambda i: (i, 0))
    if return_attention:
        out_shape = (out2_struct,
                     jax.ShapeDtypeStruct((b * H, lq, lk), jnp.float32))
        out_specs = (out2_spec,
                     pl.BlockSpec((nb * H, lq, lk), lambda i: (i, 0, 0)))
    else:
        out_shape = out2_struct
        out_specs = out2_spec

    common_scratch = [
        pltpu.VMEM((lq, d), jnp.float32),        # q head slab (block order)
        pltpu.VMEM((lk, d), jnp.float32),        # k head slab
        pltpu.VMEM((lk, d), jnp.float32),        # v head slab
        pltpu.VMEM((lq, d), jnp.float32),        # per-head context
        pltpu.VMEM((nb * lq, md), jnp.float32),  # lane-dense merged context
    ]

    static = dict(nb=nb, H=H, lq=lq, lk=lk, md=md, d=d, eps=eps,
                  return_attention=return_attention)

    if self_attn:
        # One input stream + one matmul against the concatenated QKV weight.
        w_qkv = jnp.concatenate([wq_s, params["wk"], params["wv"]],
                                axis=1).astype(jnp.bfloat16)
        b_qkv = jnp.concatenate([bq_s, params["bk"], params["bv"]]).reshape(1, 3 * md)
        kernel = functools.partial(_fused_self_attention_kernel, **static)
        scratch = [pltpu.VMEM((nb * lq, 3 * md), jnp.float32)] + common_scratch
        ins = (q.reshape(b * lq, md), w_qkv, b_qkv, wf_b, bf_r, g_r, be_r)
        in_specs = [
            pl.BlockSpec((nb * lq, md), lambda i: (i, 0)),
            resident(md, 3 * md), resident(1, 3 * md),
            resident(md, md), resident(1, md), resident(1, md), resident(1, md),
        ]
    else:
        kernel = functools.partial(_fused_cross_attention_kernel, **static)
        scratch = [pltpu.VMEM((nb * lq, md), jnp.float32),
                   pltpu.VMEM((nb * lk, md), jnp.float32),
                   pltpu.VMEM((nb * lk, md), jnp.float32)] + common_scratch
        ins = (q.reshape(b * lq, md), k.reshape(b * lk, md), v.reshape(b * lk, md),
               wq_s.astype(jnp.bfloat16),
               params["wk"].astype(jnp.bfloat16),
               params["wv"].astype(jnp.bfloat16),
               bq_s.reshape(1, md), params["bk"].reshape(1, md),
               params["bv"].reshape(1, md),
               wf_b, bf_r, g_r, be_r)
        in_specs = [
            pl.BlockSpec((nb * lq, md), lambda i: (i, 0)),
            pl.BlockSpec((nb * lk, md), lambda i: (i, 0)),
            pl.BlockSpec((nb * lk, md), lambda i: (i, 0)),
            resident(md, md), resident(md, md), resident(md, md),
            resident(1, md), resident(1, md), resident(1, md),
            resident(md, md), resident(1, md), resident(1, md), resident(1, md),
        ]

    result = pl.pallas_call(
        kernel,
        grid=grid,
        out_shape=out_shape,
        in_specs=in_specs,
        out_specs=out_specs,
        scratch_shapes=scratch,
        compiler_params=_compiler_params(),
    )(*ins)

    if return_attention:
        out2, attn_blk = result
        attention = _unscramble_attention(attn_blk, H, lq, lk)
    else:
        out2 = result
        attention = None
    return out2.reshape(b, lq, md), attention


# ----------------------------------------------------------------------------
# Pure-JAX f32 reference (for the sanity check)
# ----------------------------------------------------------------------------
def reference(q, k, v, params, num_heads):
    b, lq, m = q.shape
    lk = k.shape[1]
    d = m // num_heads
    scale = float(k.shape[-1]) ** (-0.5)
    residual = q
    qp = q.reshape(b * lq, m) @ params["wq"] + params["bq"]
    kp = k.reshape(b * lk, m) @ params["wk"] + params["bk"]
    vp = v.reshape(b * lk, m) @ params["wv"] + params["bv"]
    qh = qp.reshape(b * num_heads, lq, d)
    kh = kp.reshape(b * num_heads, lk, d)
    vh = vp.reshape(b * num_heads, lk, d)
    s = jnp.einsum("bqd,bkd->bqk", qh, kh) * scale
    p = jax.nn.softmax(s, axis=-1)
    ctx = jnp.einsum("bqk,bkd->bqd", p, vh).reshape(b * lq, m)
    out = ctx @ params["wf"] + params["bf"]
    x = residual.reshape(b * lq, m) + out
    mean = jnp.mean(x, axis=-1, keepdims=True)
    var = jnp.mean((x - mean) ** 2, axis=-1, keepdims=True)
    x = (x - mean) / jnp.sqrt(var + 1e-5) * params["ln_gamma"] + params["ln_beta"]
    return x.reshape(b, lq, m), p


# ----------------------------------------------------------------------------
# Deterministic parameter init (PyTorch-Linear-style uniform bounds)
# ----------------------------------------------------------------------------
def init_params(key, model_dim):
    keys = jax.random.split(key, 8)
    bound = 1.0 / (model_dim ** 0.5)

    def u(kk, shape):
        return jax.random.uniform(kk, shape, jnp.float32, -bound, bound)

    return {
        "wq": u(keys[0], (model_dim, model_dim)),
        "bq": u(keys[1], (model_dim,)),
        "wk": u(keys[2], (model_dim, model_dim)),
        "bk": u(keys[3], (model_dim,)),
        "wv": u(keys[4], (model_dim, model_dim)),
        "bv": u(keys[5], (model_dim,)),
        "wf": u(keys[6], (model_dim, model_dim)),
        "bf": u(keys[7], (model_dim,)),
        "ln_gamma": jnp.ones((model_dim,), jnp.float32),
        "ln_beta": jnp.zeros((model_dim,), jnp.float32),
    }


if __name__ == "__main__":
    batch, seq, model_dim, num_heads = 2, 8, 32, 4

    key = jax.random.PRNGKey(0)
    kq, kk, kv, kp = jax.random.split(key, 4)
    q = jax.random.normal(kq, (batch, seq, model_dim), jnp.float32)
    k = jax.random.normal(kk, (batch, seq, model_dim), jnp.float32)
    v = jax.random.normal(kv, (batch, seq, model_dim), jnp.float32)
    params = init_params(kp, model_dim)

    # General (cross-attention) path, attention probabilities returned.
    out, attn = multi_head_attention(q, k, v, params, num_heads,
                                     return_attention=True)
    out = jax.block_until_ready(out)
    attn = jax.block_until_ready(attn)

    ref_out, ref_attn = reference(q, k, v, params, num_heads)
    assert out.shape == (batch, seq, model_dim)
    assert attn.shape == (batch * num_heads, seq, seq)
    # bf16 MXU operands with f32 accumulation -> looser tolerance.
    assert jnp.allclose(out, ref_out, atol=2e-2, rtol=2e-2)
    assert jnp.allclose(attn, ref_attn, atol=1e-2, rtol=1e-2)

    # Self-attention hot path: single input stream, fused (md, 3*md) QKV weight,
    # no attention-probability writeback.
    out_sa, attn_sa = multi_head_attention(q, q, q, params, num_heads,
                                           return_attention=False)
    out_sa = jax.block_until_ready(out_sa)
    ref_sa, _ = reference(q, q, q, params, num_heads)
    assert attn_sa is None
    assert jnp.allclose(out_sa, ref_sa, atol=2e-2, rtol=2e-2)

    print("KERNEL_OK")
</pallas_src>

<mosaic_0001>
module attributes {stable_mosaic.version = 11 : i64} {
  func.func @_fused_cross_attention_kernel(%arg0: i32, %arg1: memref<8x32xf32, #tpu.memory_space<vmem>>, %arg2: memref<8x32xf32, #tpu.memory_space<vmem>>, %arg3: memref<8x32xf32, #tpu.memory_space<vmem>>, %arg4: memref<32x32xbf16, #tpu.memory_space<vmem>>, %arg5: memref<32x32xbf16, #tpu.memory_space<vmem>>, %arg6: memref<32x32xbf16, #tpu.memory_space<vmem>>, %arg7: memref<1x32xf32, #tpu.memory_space<vmem>>, %arg8: memref<1x32xf32, #tpu.memory_space<vmem>>, %arg9: memref<1x32xf32, #tpu.memory_space<vmem>>, %arg10: memref<32x32xbf16, #tpu.memory_space<vmem>>, %arg11: memref<1x32xf32, #tpu.memory_space<vmem>>, %arg12: memref<1x32xf32, #tpu.memory_space<vmem>>, %arg13: memref<1x32xf32, #tpu.memory_space<vmem>>, %arg14: memref<8x32xf32, #tpu.memory_space<vmem>>, %arg15: memref<4x8x8xf32, #tpu.memory_space<vmem>>, %arg16: memref<8x32xf32, #tpu.memory_space<vmem>>, %arg17: memref<8x32xf32, #tpu.memory_space<vmem>>, %arg18: memref<8x32xf32, #tpu.memory_space<vmem>>, %arg19: memref<8x8xf32, #tpu.memory_space<vmem>>, %arg20: memref<8x8xf32, #tpu.memory_space<vmem>>, %arg21: memref<8x8xf32, #tpu.memory_space<vmem>>, %arg22: memref<8x8xf32, #tpu.memory_space<vmem>>, %arg23: memref<8x32xf32, #tpu.memory_space<vmem>>) attributes {dimension_semantics = [#tpu.dimension_semantics<parallel>], iteration_bounds = array<i64: 2>, scalar_prefetch = 0 : i64, scratch_operands = 8 : i64, tpu.core_type = #tpu.core_type<tc>, window_params = [{transform_indices = @transform_0, window_bounds = array<i64: 8, 32>}, {transform_indices = @transform_1, window_bounds = array<i64: 8, 32>}, {transform_indices = @transform_2, window_bounds = array<i64: 8, 32>}, {pipeline_mode = #tpu.pipeline_mode<synchronous>, transform_indices = @transform_3, window_bounds = array<i64: 32, 32>}, {pipeline_mode = #tpu.pipeline_mode<synchronous>, transform_indices = @transform_4, window_bounds = array<i64: 32, 32>}, {pipeline_mode = #tpu.pipeline_mode<synchronous>, transform_indices = @transform_5, window_bounds = array<i64: 32, 32>}, {pipeline_mode = #tpu.pipeline_mode<synchronous>, transform_indices = @transform_6, window_bounds = array<i64: 1, 32>}, {pipeline_mode = #tpu.pipeline_mode<synchronous>, transform_indices = @transform_7, window_bounds = array<i64: 1, 32>}, {pipeline_mode = #tpu.pipeline_mode<synchronous>, transform_indices = @transform_8, window_bounds = array<i64: 1, 32>}, {pipeline_mode = #tpu.pipeline_mode<synchronous>, transform_indices = @transform_9, window_bounds = array<i64: 32, 32>}, {pipeline_mode = #tpu.pipeline_mode<synchronous>, transform_indices = @transform_10, window_bounds = array<i64: 1, 32>}, {pipeline_mode = #tpu.pipeline_mode<synchronous>, transform_indices = @transform_11, window_bounds = array<i64: 1, 32>}, {pipeline_mode = #tpu.pipeline_mode<synchronous>, transform_indices = @transform_12, window_bounds = array<i64: 1, 32>}, {transform_indices = @transform_13, window_bounds = array<i64: 8, 32>}, {transform_indices = @transform_14, window_bounds = array<i64: 4, 8, 8>}]} {
    %c0 = arith.constant 0 : index
    %c0_0 = arith.constant 0 : index
    %0 = vector.load %arg1[%c0, %c0_0] : memref<8x32xf32, #tpu.memory_space<vmem>>, vector<8x32xf32>
    %1 = arith.truncf %0 : vector<8x32xf32> to vector<8x32xbf16>
    %c0_1 = arith.constant 0 : index
    %c0_2 = arith.constant 0 : index
    %2 = vector.load %arg4[%c0_1, %c0_2] : memref<32x32xbf16, #tpu.memory_space<vmem>>, vector<32x32xbf16>
    %cst = arith.constant dense<0.000000e+00> : vector<8x32xf32>
    %3 = tpu.matmul %1, %2, %cst {dimension_numbers = #tpu.dot_dimension_numbers<[1], [0], [0], [1], [0, 0, 1, 1], [], []>} : vector<8x32xbf16>, vector<32x32xbf16>, vector<8x32xf32> -> vector<8x32xf32>
    %c0_3 = arith.constant 0 : index
    %c0_4 = arith.constant 0 : index
    %4 = vector.load %arg7[%c0_3, %c0_4] : memref<1x32xf32, #tpu.memory_space<vmem>>, vector<1x32xf32>
    %5 = vector.broadcast %4 : vector<1x32xf32> to vector<8x32xf32>
    %6 = arith.addf %3, %5 : vector<8x32xf32>
    %c0_5 = arith.constant 0 : index
    %c0_6 = arith.constant 0 : index
    %7 = vector.load %arg16[%c0_5, %c0_6] : memref<8x32xf32, #tpu.memory_space<vmem>>, vector<8x32xf32>
    tpu.vector_store %arg16[%c0_5, %c0_6], %6 {strides = array<i32>} : memref<8x32xf32, #tpu.memory_space<vmem>>, vector<8x32xf32>,
    %c0_7 = arith.constant 0 : index
    %c0_8 = arith.constant 0 : index
    %8 = vector.load %arg2[%c0_7, %c0_8] : memref<8x32xf32, #tpu.memory_space<vmem>>, vector<8x32xf32>
    %9 = arith.truncf %8 : vector<8x32xf32> to vector<8x32xbf16>
    %c0_9 = arith.constant 0 : index
    %c0_10 = arith.constant 0 : index
    %10 = vector.load %arg5[%c0_9, %c0_10] : memref<32x32xbf16, #tpu.memory_space<vmem>>, vector<32x32xbf16>
    %cst_11 = arith.constant dense<0.000000e+00> : vector<8x32xf32>
    %11 = tpu.matmul %9, %10, %cst_11 {dimension_numbers = #tpu.dot_dimension_numbers<[1], [0], [0], [1], [0, 0, 1, 1], [], []>} : vector<8x32xbf16>, vector<32x32xbf16>, vector<8x32xf32> -> vector<8x32xf32>
    %c0_12 = arith.constant 0 : index
    %c0_13 = arith.constant 0 : index
    %12 = vector.load %arg8[%c0_12, %c0_13] : memref<1x32xf32, #tpu.memory_space<vmem>>, vector<1x32xf32>
    %13 = vector.broadcast %12 : vector<1x32xf32> to vector<8x32xf32>
    %14 = arith.addf %11, %13 : vector<8x32xf32>
    %c0_14 = arith.constant 0 : index
    %c0_15 = arith.constant 0 : index
    %15 = vector.load %arg17[%c0_14, %c0_15] : memref<8x32xf32, #tpu.memory_space<vmem>>, vector<8x32xf32>
    tpu.vector_store %arg17[%c0_14, %c0_15], %14 {strides = array<i32>} : memref<8x32xf32, #tpu.memory_space<vmem>>, vector<8x32xf32>,
    %c0_16 = arith.constant 0 : index
    %c0_17 = arith.constant 0 : index
    %16 = vector.load %arg3[%c0_16, %c0_17] : memref<8x32xf32, #tpu.memory_space<vmem>>, vector<8x32xf32>
    %17 = arith.truncf %16 : vector<8x32xf32> to vector<8x32xbf16>
    %c0_18 = arith.constant 0 : index
    %c0_19 = arith.constant 0 : index
    %18 = vector.load %arg6[%c0_18, %c0_19] : memref<32x32xbf16, #tpu.memory_space<vmem>>, vector<32x32xbf16>
    %cst_20 = arith.constant dense<0.000000e+00> : vector<8x32xf32>
    %19 = tpu.matmul %17, %18, %cst_20 {dimension_numbers = #tpu.dot_dimension_numbers<[1], [0], [0], [1], [0, 0, 1, 1], [], []>} : vector<8x32xbf16>, vector<32x32xbf16>, vector<8x32xf32> -> vector<8x32xf32>
    %c0_21 = arith.constant 0 : index
    %c0_22 = arith.constant 0 : index
    %20 = vector.load %arg9[%c0_21, %c0_22] : memref<1x32xf32, #tpu.memory_space<vmem>>, vector<1x32xf32>
    %21 = vector.broadcast %20 : vector<1x32xf32> to vector<8x32xf32>
    %22 = arith.addf %19, %21 : vector<8x32xf32>
    %c0_23 = arith.constant 0 : index
    %c0_24 = arith.constant 0 : index
    %23 = vector.load %arg18[%c0_23, %c0_24] : memref<8x32xf32, #tpu.memory_space<vmem>>, vector<8x32xf32>
    tpu.vector_store %arg18[%c0_23, %c0_24], %22 {strides = array<i32>} : memref<8x32xf32, #tpu.memory_space<vmem>>, vector<8x32xf32>,
    %c0_25 = arith.constant 0 : index
    %c0_26 = arith.constant 0 : index
    %24 = vector.load %arg16[%c0_25, %c0_26] : memref<8x32xf32, #tpu.memory_space<vmem>>, vector<2x8xf32>
    %c0_27 = arith.constant 0 : index
    %c0_28 = arith.constant 0 : index
    %25 = vector.load %arg19[%c0_27, %c0_28] : memref<8x8xf32, #tpu.memory_space<vmem>>, vector<2x8xf32>
    tpu.vector_store %arg19[%c0_27, %c0_28], %24 {strides = array<i32>} : memref<8x8xf32, #tpu.memory_space<vmem>>, vector<2x8xf32>,
    %c0_29 = arith.constant 0 : index
    %c0_30 = arith.constant 0 : index
    %26 = vector.load %arg17[%c0_29, %c0_30] : memref<8x32xf32, #tpu.memory_space<vmem>>, vector<2x8xf32>
    %c0_31 = arith.constant 0 : index
    %c0_32 = arith.constant 0 : index
    %27 = vector.load %arg20[%c0_31, %c0_32] : memref<8x8xf32, #tpu.memory_space<vmem>>, vector<2x8xf32>
    tpu.vector_store %arg20[%c0_31, %c0_32], %26 {strides = array<i32>} : memref<8x8xf32, #tpu.memory_space<vmem>>, vector<2x8xf32>,
    %c0_33 = arith.constant 0 : index
    %c0_34 = arith.constant 0 : index
    %28 = vector.load %arg18[%c0_33, %c0_34] : memref<8x32xf32, #tpu.memory_space<vmem>>, vector<2x8xf32>
    %c0_35 = arith.constant 0 : index
    %c0_36 = arith.constant 0 : index
    %29 = vector.load %arg21[%c0_35, %c0_36] : memref<8x8xf32, #tpu.memory_space<vmem>>, vector<2x8xf32>
    tpu.vector_store %arg21[%c0_35, %c0_36], %28 {strides = array<i32>} : memref<8x8xf32, #tpu.memory_space<vmem>>, vector<2x8xf32>,
    %c0_37 = arith.constant 0 : index
    %c8 = arith.constant 8 : index
    %30 = vector.load %arg16[%c0_37, %c8] : memref<8x32xf32, #tpu.memory_space<vmem>>, vector<2x8xf32>
    %c2 = arith.constant 2 : index
    %c0_38 = arith.constant 0 : index
    %31 = vector.load %arg19[%c2, %c0_38] : memref<8x8xf32, #tpu.memory_space<vmem>>, vector<2x8xf32>
    tpu.vector_store %arg19[%c2, %c0_38], %30 {strides = array<i32>} : memref<8x8xf32, #tpu.memory_space<vmem>>, vector<2x8xf32>,
    %c0_39 = arith.constant 0 : index
    %c8_40 = arith.constant 8 : index
    %32 = vector.load %arg17[%c0_39, %c8_40] : memref<8x32xf32, #tpu.memory_space<vmem>>, vector<2x8xf32>
    %c2_41 = arith.constant 2 : index
    %c0_42 = arith.constant 0 : index
    %33 = vector.load %arg20[%c2_41, %c0_42] : memref<8x8xf32, #tpu.memory_space<vmem>>, vector<2x8xf32>
    tpu.vector_store %arg20[%c2_41, %c0_42], %32 {strides = array<i32>} : memref<8x8xf32, #tpu.memory_space<vmem>>, vector<2x8xf32>,
    %c0_43 = arith.constant 0 : index
    %c8_44 = arith.constant 8 : index
    %34 = vector.load %arg18[%c0_43, %c8_44] : memref<8x32xf32, #tpu.memory_space<vmem>>, vector<2x8xf32>
    %c2_45 = arith.constant 2 : index
    %c0_46 = arith.constant 0 : index
    %35 = vector.load %arg21[%c2_45, %c0_46] : memref<8x8xf32, #tpu.memory_space<vmem>>, vector<2x8xf32>
    tpu.vector_store %arg21[%c2_45, %c0_46], %34 {strides = array<i32>} : memref<8x8xf32, #tpu.memory_space<vmem>>, vector<2x8xf32>,
    %c0_47 = arith.constant 0 : index
    %c16 = arith.constant 16 : index
    %36 = vector.load %arg16[%c0_47, %c16] : memref<8x32xf32, #tpu.memory_space<vmem>>, vector<2x8xf32>
    %c4 = arith.constant 4 : index
    %c0_48 = arith.constant 0 : index
    %37 = vector.load %arg19[%c4, %c0_48] : memref<8x8xf32, #tpu.memory_space<vmem>>, vector<2x8xf32>
    tpu.vector_store %arg19[%c4, %c0_48], %36 {strides = array<i32>} : memref<8x8xf32, #tpu.memory_space<vmem>>, vector<2x8xf32>,
    %c0_49 = arith.constant 0 : index
    %c16_50 = arith.constant 16 : index
    %38 = vector.load %arg17[%c0_49, %c16_50] : memref<8x32xf32, #tpu.memory_space<vmem>>, vector<2x8xf32>
    %c4_51 = arith.constant 4 : index
    %c0_52 = arith.constant 0 : index
    %39 = vector.load %arg20[%c4_51, %c0_52] : memref<8x8xf32, #tpu.memory_space<vmem>>, vector<2x8xf32>
    tpu.vector_store %arg20[%c4_51, %c0_52], %38 {strides = array<i32>} : memref<8x8xf32, #tpu.memory_space<vmem>>, vector<2x8xf32>,
    %c0_53 = arith.constant 0 : index
    %c16_54 = arith.constant 16 : index
    %40 = vector.load %arg18[%c0_53, %c16_54] : memref<8x32xf32, #tpu.memory_space<vmem>>, vector<2x8xf32>
    %c4_55 = arith.constant 4 : index
    %c0_56 = arith.constant 0 : index
    %41 = vector.load %arg21[%c4_55, %c0_56] : memref<8x8xf32, #tpu.memory_space<vmem>>, vector<2x8xf32>
    tpu.vector_store %arg21[%c4_55, %c0_56], %40 {strides = array<i32>} : memref<8x8xf32, #tpu.memory_space<vmem>>, vector<2x8xf32>,
    %c0_57 = arith.constant 0 : index
    %c24 = arith.constant 24 : index
    %42 = vector.load %arg16[%c0_57, %c24] : memref<8x32xf32, #tpu.memory_space<vmem>>, vector<2x8xf32>
    %c6 = arith.constant 6 : index
    %c0_58 = arith.constant 0 : index
    %43 = vector.load %arg19[%c6, %c0_58] : memref<8x8xf32, #tpu.memory_space<vmem>>, vector<2x8xf32>
    tpu.vector_store %arg19[%c6, %c0_58], %42 {strides = array<i32>} : memref<8x8xf32, #tpu.memory_space<vmem>>, vector<2x8xf32>,
    %c0_59 = arith.constant 0 : index
    %c24_60 = arith.constant 24 : index
    %44 = vector.load %arg17[%c0_59, %c24_60] : memref<8x32xf32, #tpu.memory_space<vmem>>, vector<2x8xf32>
    %c6_61 = arith.constant 6 : index
    %c0_62 = arith.constant 0 : index
    %45 = vector.load %arg20[%c6_61, %c0_62] : memref<8x8xf32, #tpu.memory_space<vmem>>, vector<2x8xf32>
    tpu.vector_store %arg20[%c6_61, %c0_62], %44 {strides = array<i32>} : memref<8x8xf32, #tpu.memory_space<vmem>>, vector<2x8xf32>,
    %c0_63 = arith.constant 0 : index
    %c24_64 = arith.constant 24 : index
    %46 = vector.load %arg18[%c0_63, %c24_64] : memref<8x32xf32, #tpu.memory_space<vmem>>, vector<2x8xf32>
    %c6_65 = arith.constant 6 : index
    %c0_66 = arith.constant 0 : index
    %47 = vector.load %arg21[%c6_65, %c0_66] : memref<8x8xf32, #tpu.memory_space<vmem>>, vector<2x8xf32>
    tpu.vector_store %arg21[%c6_65, %c0_66], %46 {strides = array<i32>} : memref<8x8xf32, #tpu.memory_space<vmem>>, vector<2x8xf32>,
    %c0_67 = arith.constant 0 : index
    %c0_68 = arith.constant 0 : index
    %48 = vector.load %arg19[%c0_67, %c0_68] : memref<8x8xf32, #tpu.memory_space<vmem>>, vector<8x8xf32>
    %49 = arith.truncf %48 : vector<8x8xf32> to vector<8x8xbf16>
    %c0_69 = arith.constant 0 : index
    %c0_70 = arith.constant 0 : index
    %50 = vector.load %arg20[%c0_69, %c0_70] : memref<8x8xf32, #tpu.memory_space<vmem>>, vector<8x8xf32>
    %51 = arith.truncf %50 : vector<8x8xf32> to vector<8x8xbf16>
    %cst_71 = arith.constant dense<0.000000e+00> : vector<8x8xf32>
    %52 = tpu.matmul %49, %51, %cst_71 {dimension_numbers = #tpu.dot_dimension_numbers<[1], [1], [0], [0], [0, 0, 1, 0], [], []>} : vector<8x8xbf16>, vector<8x8xbf16>, vector<8x8xf32> -> vector<8x8xf32>
    %cst_72 = arith.constant dense<0xFF800000> : vector<8xf32>
    %53 = vector.multi_reduction <maximumf>, %52, %cst_72 [1] : vector<8x8xf32> to vector<8xf32>
    %54 = vector.shape_cast %53 : vector<8xf32> to vector<8x1xf32>
    %55 = vector.broadcast %54 : vector<8x1xf32> to vector<8x8xf32>
    %56 = arith.subf %52, %55 : vector<8x8xf32>
    %57 = math.exp %56 : vector<8x8xf32>
    %cst_73 = arith.constant dense<0.000000e+00> : vector<8xf32>
    %58 = vector.multi_reduction <add>, %57, %cst_73 [1] : vector<8x8xf32> to vector<8xf32>
    %59 = vector.shape_cast %58 : vector<8xf32> to vector<8x1xf32>
    %60 = vector.broadcast %59 : vector<8x1xf32> to vector<8x8xf32>
    %61 = arith.divf %57, %60 : vector<8x8xf32>
    %62 = arith.truncf %61 : vector<8x8xf32> to vector<8x8xbf16>
    %c0_74 = arith.constant 0 : index
    %c0_75 = arith.constant 0 : index
    %63 = vector.load %arg21[%c0_74, %c0_75] : memref<8x8xf32, #tpu.memory_space<vmem>>, vector<8x8xf32>
    %64 = arith.truncf %63 : vector<8x8xf32> to vector<8x8xbf16>
    %cst_76 = arith.constant dense<0.000000e+00> : vector<8x8xf32>
    %65 = tpu.matmul %62, %64, %cst_76 {dimension_numbers = #tpu.dot_dimension_numbers<[1], [0], [0], [1], [0, 0, 1, 1], [], []>} : vector<8x8xbf16>, vector<8x8xbf16>, vector<8x8xf32> -> vector<8x8xf32>
    %c0_77 = arith.constant 0 : index
    %c0_78 = arith.constant 0 : index
    %66 = vector.load %arg22[%c0_77, %c0_78] : memref<8x8xf32, #tpu.memory_space<vmem>>, vector<8x8xf32>
    tpu.vector_store %arg22[%c0_77, %c0_78], %65 {strides = array<i32>} : memref<8x8xf32, #tpu.memory_space<vmem>>, vector<8x8xf32>,
    %c0_79 = arith.constant 0 : index
    %c0_80 = arith.constant 0 : index
    %67 = vector.load %arg22[%c0_79, %c0_80] : memref<8x8xf32, #tpu.memory_space<vmem>>, vector<2x8xf32>
    %c0_81 = arith.constant 0 : index
    %c0_82 = arith.constant 0 : index
    %68 = vector.load %arg23[%c0_81, %c0_82] : memref<8x32xf32, #tpu.memory_space<vmem>>, vector<2x8xf32>
    tpu.vector_store %arg23[%c0_81, %c0_82], %67 {strides = array<i32>} : memref<8x32xf32, #tpu.memory_space<vmem>>, vector<2x8xf32>,
    %c2_83 = arith.constant 2 : index
    %c0_84 = arith.constant 0 : index
    %69 = vector.load %arg22[%c2_83, %c0_84] : memref<8x8xf32, #tpu.memory_space<vmem>>, vector<2x8xf32>
    %c0_85 = arith.constant 0 : index
    %c8_86 = arith.constant 8 : index
    %70 = vector.load %arg23[%c0_85, %c8_86] : memref<8x32xf32, #tpu.memory_space<vmem>>, vector<2x8xf32>
    tpu.vector_store %arg23[%c0_85, %c8_86], %69 {strides = array<i32>} : memref<8x32xf32, #tpu.memory_space<vmem>>, vector<2x8xf32>,
    %c4_87 = arith.constant 4 : index
    %c0_88 = arith.constant 0 : index
    %71 = vector.load %arg22[%c4_87, %c0_88] : memref<8x8xf32, #tpu.memory_space<vmem>>, vector<2x8xf32>
    %c0_89 = arith.constant 0 : index
    %c16_90 = arith.constant 16 : index
    %72 = vector.load %arg23[%c0_89, %c16_90] : memref<8x32xf32, #tpu.memory_space<vmem>>, vector<2x8xf32>
    tpu.vector_store %arg23[%c0_89, %c16_90], %71 {strides = array<i32>} : memref<8x32xf32, #tpu.memory_space<vmem>>, vector<2x8xf32>,
    %c6_91 = arith.constant 6 : index
    %c0_92 = arith.constant 0 : index
    %73 = vector.load %arg22[%c6_91, %c0_92] : memref<8x8xf32, #tpu.memory_space<vmem>>, vector<2x8xf32>
    %c0_93 = arith.constant 0 : index
    %c24_94 = arith.constant 24 : index
    %74 = vector.load %arg23[%c0_93, %c24_94] : memref<8x32xf32, #tpu.memory_space<vmem>>, vector<2x8xf32>
    tpu.vector_store %arg23[%c0_93, %c24_94], %73 {strides = array<i32>} : memref<8x32xf32, #tpu.memory_space<vmem>>, vector<2x8xf32>,
    %c0_95 = arith.constant 0 : index
    %c0_96 = arith.constant 0 : index
    %c0_97 = arith.constant 0 : index
    %75 = vector.load %arg15[%c0_95, %c0_96, %c0_97] : memref<4x8x8xf32, #tpu.memory_space<vmem>>, vector<1x8x8xf32>
    %76 = vector.shape_cast %75 : vector<1x8x8xf32> to vector<8x8xf32>
    %77 = vector.shape_cast %61 : vector<8x8xf32> to vector<1x8x8xf32>
    tpu.vector_store %arg15[%c0_95, %c0_96, %c0_97], %77 {strides = array<i32>} : memref<4x8x8xf32, #tpu.memory_space<vmem>>, vector<1x8x8xf32>,
    %c2_98 = arith.constant 2 : index
    %c0_99 = arith.constant 0 : index
    %78 = vector.load %arg16[%c2_98, %c0_99] : memref<8x32xf32, #tpu.memory_space<vmem>>, vector<2x8xf32>
    %c0_100 = arith.constant 0 : index
    %c0_101 = arith.constant 0 : index
    %79 = vector.load %arg19[%c0_100, %c0_101] : memref<8x8xf32, #tpu.memory_space<vmem>>, vector<2x8xf32>
    tpu.vector_store %arg19[%c0_100, %c0_101], %78 {strides = array<i32>} : memref<8x8xf32, #tpu.memory_space<vmem>>, vector<2x8xf32>,
    %c2_102 = arith.constant 2 : index
    %c0_103 = arith.constant 0 : index
    %80 = vector.load %arg17[%c2_102, %c0_103] : memref<8x32xf32, #tpu.memory_space<vmem>>, vector<2x8xf32>
    %c0_104 = arith.constant 0 : index
    %c0_105 = arith.constant 0 : index
    %81 = vector.load %arg20[%c0_104, %c0_105] : memref<8x8xf32, #tpu.memory_space<vmem>>, vector<2x8xf32>
    tpu.vector_store %arg20[%c0_104, %c0_105], %80 {strides = array<i32>} : memref<8x8xf32, #tpu.memory_space<vmem>>, vector<2x8xf32>,
    %c2_106 = arith.constant 2 : index
    %c0_107 = arith.constant 0 : index
    %82 = vector.load %arg18[%c2_106, %c0_107] : memref<8x32xf32, #tpu.memory_space<vmem>>, vector<2x8xf32>
    %c0_108 = arith.constant 0 : index
    %c0_109 = arith.constant 0 : index
    %83 = vector.load %arg21[%c0_108, %c0_109] : memref<8x8xf32, #tpu.memory_space<vmem>>, vector<2x8xf32>
    tpu.vector_store %arg21[%c0_108, %c0_109], %82 {strides = array<i32>} : memref<8x8xf32, #tpu.memory_space<vmem>>, vector<2x8xf32>,
    %c2_110 = arith.constant 2 : index
    %c8_111 = arith.constant 8 : index
    %84 = vector.load %arg16[%c2_110, %c8_111] : memref<8x32xf32, #tpu.memory_space<vmem>>, vector<2x8xf32>
    %c2_112 = arith.constant 2 : index
    %c0_113 = arith.constant 0 : index
    %85 = vector.load %arg19[%c2_112, %c0_113] : memref<8x8xf32, #tpu.memory_space<vmem>>, vector<2x8xf32>
    tpu.vector_store %arg19[%c2_112, %c0_113], %84 {strides = array<i32>} : memref<8x8xf32, #tpu.memory_space<vmem>>, vector<2x8xf32>,
    %c2_114 = arith.constant 2 : index
    %c8_115 = arith.constant 8 : index
    %86 = vector.load %arg17[%c2_114, %c8_115] : memref<8x32xf32, #tpu.memory_space<vmem>>, vector<2x8xf32>
    %c2_116 = arith.constant 2 : index
    %c0_117 = arith.constant 0 : index
    %87 = vector.load %arg20[%c2_116, %c0_117] : memref<8x8xf32, #tpu.memory_space<vmem>>, vector<2x8xf32>
    tpu.vector_store %arg20[%c2_116, %c0_117], %86 {strides = array<i32>} : memref<8x8xf32, #tpu.memory_space<vmem>>, vector<2x8xf32>,
    %c2_118 = arith.constant 2 : index
    %c8_119 = arith.constant 8 : index
    %88 = vector.load %arg18[%c2_118, %c8_119] : memref<8x32xf32, #tpu.memory_space<vmem>>, vector<2x8xf32>
    %c2_120 = arith.constant 2 : index
    %c0_121 = arith.constant 0 : index
    %89 = vector.load %arg21[%c2_120, %c0_121] : memref<8x8xf32, #tpu.memory_space<vmem>>, vector<2x8xf32>
    tpu.vector_store %arg21[%c2_120, %c0_121], %88 {strides = array<i32>} : memref<8x8xf32, #tpu.memory_space<vmem>>, vector<2x8xf32>,
    %c2_122 = arith.constant 2 : index
    %c16_123 = arith.constant 16 : index
    %90 = vector.load %arg16[%c2_122, %c16_123] : memref<8x32xf32, #tpu.memory_space<vmem>>, vector<2x8xf32>
    %c4_124 = arith.constant 4 : index
    %c0_125 = arith.constant 0 : index
    %91 = vector.load %arg19[%c4_124, %c0_125] : memref<8x8xf32, #tpu.memory_space<vmem>>, vector<2x8xf32>
    tpu.vector_store %arg19[%c4_124, %c0_125], %90 {strides = array<i32>} : memref<8x8xf32, #tpu.memory_space<vmem>>, vector<2x8xf32>,
    %c2_126 = arith.constant 2 : index
    %c16_127 = arith.constant 16 : index
    %92 = vector.load %arg17[%c2_126, %c16_127] : memref<8x32xf32, #tpu.memory_space<vmem>>, vector<2x8xf32>
    %c4_128 = arith.constant 4 : index
    %c0_129 = arith.constant 0 : index
    %93 = vector.load %arg20[%c4_128, %c0_129] : memref<8x8xf32, #tpu.memory_space<vmem>>, vector<2x8xf32>
    tpu.vector_store %arg20[%c4_128, %c0_129], %92 {strides = array<i32>} : memref<8x8xf32, #tpu.memory_space<vmem>>, vector<2x8xf32>,
    %c2_130 = arith.constant 2 : index
    %c16_131 = arith.constant 16 : index
    %94 = vector.load %arg18[%c2_130, %c16_131] : memref<8x32xf32, #tpu.memory_space<vmem>>, vector<2x8xf32>
    %c4_132 = arith.constant 4 : index
    %c0_133 = arith.constant 0 : index
    %95 = vector.load %arg21[%c4_132, %c0_133] : memref<8x8xf32, #tpu.memory_space<vmem>>, vector<2x8xf32>
    tpu.vector_store %arg21[%c4_132, %c0_133], %94 {strides = array<i32>} : memref<8x8xf32, #tpu.memory_space<vmem>>, vector<2x8xf32>,
    %c2_134 = arith.constant 2 : index
    %c24_135 = arith.constant 24 : index
    %96 = vector.load %arg16[%c2_134, %c24_135] : memref<8x32xf32, #tpu.memory_space<vmem>>, vector<2x8xf32>
    %c6_136 = arith.constant 6 : index
    %c0_137 = arith.constant 0 : index
    %97 = vector.load %arg19[%c6_136, %c0_137] : memref<8x8xf32, #tpu.memory_space<vmem>>, vector<2x8xf32>
    tpu.vector_store %arg19[%c6_136, %c0_137], %96 {strides = array<i32>} : memref<8x8xf32, #tpu.memory_space<vmem>>, vector<2x8xf32>,
    %c2_138 = arith.constant 2 : index
    %c24_139 = arith.constant 24 : index
    %98 = vector.load %arg17[%c2_138, %c24_139] : memref<8x32xf32, #tpu.memory_space<vmem>>, vector<2x8xf32>
    %c6_140 = arith.constant 6 : index
    %c0_141 = arith.constant 0 : index
    %99 = vector.load %arg20[%c6_140, %c0_141] : memref<8x8xf32, #tpu.memory_space<vmem>>, vector<2x8xf32>
    tpu.vector_store %arg20[%c6_140, %c0_141], %98 {strides = array<i32>} : memref<8x8xf32, #tpu.memory_space<vmem>>, vector<2x8xf32>,
    %c2_142 = arith.constant 2 : index
    %c24_143 = arith.constant 24 : index
    %100 = vector.load %arg18[%c2_142, %c24_143] : memref<8x32xf32, #tpu.memory_space<vmem>>, vector<2x8xf32>
    %c6_144 = arith.constant 6 : index
    %c0_145 = arith.constant 0 : index
    %101 = vector.load %arg21[%c6_144, %c0_145] : memref<8x8xf32, #tpu.memory_space<vmem>>, vector<2x8xf32>
    tpu.vector_store %arg21[%c6_144, %c0_145], %100 {strides = array<i32>} : memref<8x8xf32, #tpu.memory_space<vmem>>, vector<2x8xf32>,
    %c0_146 = arith.constant 0 : index
    %c0_147 = arith.constant 0 : index
    %102 = vector.load %arg19[%c0_146, %c0_147] : memref<8x8xf32, #tpu.memory_space<vmem>>, vector<8x8xf32>
    %103 = arith.truncf %102 : vector<8x8xf32> to vector<8x8xbf16>
    %c0_148 = arith.constant 0 : index
    %c0_149 = arith.constant 0 : index
    %104 = vector.load %arg20[%c0_148, %c0_149] : memref<8x8xf32, #tpu.memory_space<vmem>>, vector<8x8xf32>
    %105 = arith.truncf %104 : vector<8x8xf32> to vector<8x8xbf16>
    %cst_150 = arith.constant dense<0.000000e+00> : vector<8x8xf32>
    %106 = tpu.matmul %103, %105, %cst_150 {dimension_numbers = #tpu.dot_dimension_numbers<[1], [1], [0], [0], [0, 0, 1, 0], [], []>} : vector<8x8xbf16>, vector<8x8xbf16>, vector<8x8xf32> -> vector<8x8xf32>
    %cst_151 = arith.constant dense<0xFF800000> : vector<8xf32>
    %107 = vector.multi_reduction <maximumf>, %106, %cst_151 [1] : vector<8x8xf32> to vector<8xf32>
    %108 = vector.shape_cast %107 : vector<8xf32> to vector<8x1xf32>
    %109 = vector.broadcast %108 : vector<8x1xf32> to vector<8x8xf32>
    %110 = arith.subf %106, %109 : vector<8x8xf32>
    %111 = math.exp %110 : vector<8x8xf32>
    %cst_152 = arith.constant dense<0.000000e+00> : vector<8xf32>
    %112 = vector.multi_reduction <add>, %111, %cst_152 [1] : vector<8x8xf32> to vector<8xf32>
    %113 = vector.shape_cast %112 : vector<8xf32> to vector<8x1xf32>
    %114 = vector.broadcast %113 : vector<8x1xf32> to vector<8x8xf32>
    %115 = arith.divf %111, %114 : vector<8x8xf32>
    %116 = arith.truncf %115 : vector<8x8xf32> to vector<8x8xbf16>
    %c0_153 = arith.constant 0 : index
    %c0_154 = arith.constant 0 : index
    %117 = vector.load %arg21[%c0_153, %c0_154] : memref<8x8xf32, #tpu.memory_space<vmem>>, vector<8x8xf32>
    %118 = arith.truncf %117 : vector<8x8xf32> to vector<8x8xbf16>
    %cst_155 = arith.constant dense<0.000000e+00> : vector<8x8xf32>
    %119 = tpu.matmul %116, %118, %cst_155 {dimension_numbers = #tpu.dot_dimension_numbers<[1], [0], [0], [1], [0, 0, 1, 1], [], []>} : vector<8x8xbf16>, vector<8x8xbf16>, vector<8x8xf32> -> vector<8x8xf32>
    %c0_156 = arith.constant 0 : index
    %c0_157 = arith.constant 0 : index
    %120 = vector.load %arg22[%c0_156, %c0_157] : memref<8x8xf32, #tpu.memory_space<vmem>>, vector<8x8xf32>
    tpu.vector_store %arg22[%c0_156, %c0_157], %119 {strides = array<i32>} : memref<8x8xf32, #tpu.memory_space<vmem>>, vector<8x8xf32>,
    %c0_158 = arith.constant 0 : index
    %c0_159 = arith.constant 0 : index
    %121 = vector.load %arg22[%c0_158, %c0_159] : memref<8x8xf32, #tpu.memory_space<vmem>>, vector<2x8xf32>
    %c2_160 = arith.constant 2 : index
    %c0_161 = arith.constant 0 : index
    %122 = vector.load %arg23[%c2_160, %c0_161] : memref<8x32xf32, #tpu.memory_space<vmem>>, vector<2x8xf32>
    tpu.vector_store %arg23[%c2_160, %c0_161], %121 {strides = array<i32>} : memref<8x32xf32, #tpu.memory_space<vmem>>, vector<2x8xf32>,
    %c2_162 = arith.constant 2 : index
    %c0_163 = arith.constant 0 : index
    %123 = vector.load %arg22[%c2_162, %c0_163] : memref<8x8xf32, #tpu.memory_space<vmem>>, vector<2x8xf32>
    %c2_164 = arith.constant 2 : index
    %c8_165 = arith.constant 8 : index
    %124 = vector.load %arg23[%c2_164, %c8_165] : memref<8x32xf32, #tpu.memory_space<vmem>>, vector<2x8xf32>
    tpu.vector_store %arg23[%c2_164, %c8_165], %123 {strides = array<i32>} : memref<8x32xf32, #tpu.memory_space<vmem>>, vector<2x8xf32>,
    %c4_166 = arith.constant 4 : index
    %c0_167 = arith.constant 0 : index
    %125 = vector.load %arg22[%c4_166, %c0_167] : memref<8x8xf32, #tpu.memory_space<vmem>>, vector<2x8xf32>
    %c2_168 = arith.constant 2 : index
    %c16_169 = arith.constant 16 : index
    %126 = vector.load %arg23[%c2_168, %c16_169] : memref<8x32xf32, #tpu.memory_space<vmem>>, vector<2x8xf32>
    tpu.vector_store %arg23[%c2_168, %c16_169], %125 {strides = array<i32>} : memref<8x32xf32, #tpu.memory_space<vmem>>, vector<2x8xf32>,
    %c6_170 = arith.constant 6 : index
    %c0_171 = arith.constant 0 : index
    %127 = vector.load %arg22[%c6_170, %c0_171] : memref<8x8xf32, #tpu.memory_space<vmem>>, vector<2x8xf32>
    %c2_172 = arith.constant 2 : index
    %c24_173 = arith.constant 24 : index
    %128 = vector.load %arg23[%c2_172, %c24_173] : memref<8x32xf32, #tpu.memory_space<vmem>>, vector<2x8xf32>
    tpu.vector_store %arg23[%c2_172, %c24_173], %127 {strides = array<i32>} : memref<8x32xf32, #tpu.memory_space<vmem>>, vector<2x8xf32>,
    %c1 = arith.constant 1 : index
    %c0_174 = arith.constant 0 : index
    %c0_175 = arith.constant 0 : index
    %129 = vector.load %arg15[%c1, %c0_174, %c0_175] : memref<4x8x8xf32, #tpu.memory_space<vmem>>, vector<1x8x8xf32>
    %130 = vector.shape_cast %129 : vector<1x8x8xf32> to vector<8x8xf32>
    %131 = vector.shape_cast %115 : vector<8x8xf32> to vector<1x8x8xf32>
    tpu.vector_store %arg15[%c1, %c0_174, %c0_175], %131 {strides = array<i32>} : memref<4x8x8xf32, #tpu.memory_space<vmem>>, vector<1x8x8xf32>,
    %c4_176 = arith.constant 4 : index
    %c0_177 = arith.constant 0 : index
    %132 = vector.load %arg16[%c4_176, %c0_177] : memref<8x32xf32, #tpu.memory_space<vmem>>, vector<2x8xf32>
    %c0_178 = arith.constant 0 : index
    %c0_179 = arith.constant 0 : index
    %133 = vector.load %arg19[%c0_178, %c0_179] : memref<8x8xf32, #tpu.memory_space<vmem>>, vector<2x8xf32>
    tpu.vector_store %arg19[%c0_178, %c0_179], %132 {strides = array<i32>} : memref<8x8xf32, #tpu.memory_space<vmem>>, vector<2x8xf32>,
    %c4_180 = arith.constant 4 : index
    %c0_181 = arith.constant 0 : index
    %134 = vector.load %arg17[%c4_180, %c0_181] : memref<8x32xf32, #tpu.memory_space<vmem>>, vector<2x8xf32>
    %c0_182 = arith.constant 0 : index
    %c0_183 = arith.constant 0 : index
    %135 = vector.load %arg20[%c0_182, %c0_183] : memref<8x8xf32, #tpu.memory_space<vmem>>, vector<2x8xf32>
    tpu.vector_store %arg20[%c0_182, %c0_183], %134 {strides = array<i32>} : memref<8x8xf32, #tpu.memory_space<vmem>>, vector<2x8xf32>,
    %c4_184 = arith.constant 4 : index
    %c0_185 = arith.constant 0 : index
    %136 = vector.load %arg18[%c4_184, %c0_185] : memref<8x32xf32, #tpu.memory_space<vmem>>, vector<2x8xf32>
    %c0_186 = arith.constant 0 : index
    %c0_187 = arith.constant 0 : index
    %137 = vector.load %arg21[%c0_186, %c0_187] : memref<8x8xf32, #tpu.memory_space<vmem>>, vector<2x8xf32>
    tpu.vector_store %arg21[%c0_186, %c0_187], %136 {strides = array<i32>} : memref<8x8xf32, #tpu.memory_space<vmem>>, vector<2x8xf32>,
    %c4_188 = arith.constant 4 : index
    %c8_189 = arith.constant 8 : index
    %138 = vector.load %arg16[%c4_188, %c8_189] : memref<8x32xf32, #tpu.memory_space<vmem>>, vector<2x8xf32>
    %c2_190 = arith.constant 2 : index
    %c0_191 = arith.constant 0 : index
    %139 = vector.load %arg19[%c2_190, %c0_191] : memref<8x8xf32, #tpu.memory_space<vmem>>, vector<2x8xf32>
    tpu.vector_store %arg19[%c2_190, %c0_191], %138 {strides = array<i32>} : memref<8x8xf32, #tpu.memory_space<vmem>>, vector<2x8xf32>,
    %c4_192 = arith.constant 4 : index
    %c8_193 = arith.constant 8 : index
    %140 = vector.load %arg17[%c4_192, %c8_193] : memref<8x32xf32, #tpu.memory_space<vmem>>, vector<2x8xf32>
    %c2_194 = arith.constant 2 : index
    %c0_195 = arith.constant 0 : index
    %141 = vector.load %arg20[%c2_194, %c0_195] : memref<8x8xf32, #tpu.memory_space<vmem>>, vector<2x8xf32>
    tpu.vector_store %arg20[%c2_194, %c0_195], %140 {strides = array<i32>} : memref<8x8xf32, #tpu.memory_space<vmem>>, vector<2x8xf32>,
    %c4_196 = arith.constant 4 : index
    %c8_197 = arith.constant 8 : index
    %142 = vector.load %arg18[%c4_196, %c8_197] : memref<8x32xf32, #tpu.memory_space<vmem>>, vector<2x8xf32>
    %c2_198 = arith.constant 2 : index
    %c0_199 = arith.constant 0 : index
    %143 = vector.load %arg21[%c2_198, %c0_199] : memref<8x8xf32, #tpu.memory_space<vmem>>, vector<2x8xf32>
    tpu.vector_store %arg21[%c2_198, %c0_199], %142 {strides = array<i32>} : memref<8x8xf32, #tpu.memory_space<vmem>>, vector<2x8xf32>,
    %c4_200 = arith.constant 4 : index
    %c16_201 = arith.constant 16 : index
    %144 = vector.load %arg16[%c4_200, %c16_201] : memref<8x32xf32, #tpu.memory_space<vmem>>, vector<2x8xf32>
    %c4_202 = arith.constant 4 : index
    %c0_203 = arith.constant 0 : index
    %145 = vector.load %arg19[%c4_202, %c0_203] : memref<8x8xf32, #tpu.memory_space<vmem>>, vector<2x8xf32>
    tpu.vector_store %arg19[%c4_202, %c0_203], %144 {strides = array<i32>} : memref<8x8xf32, #tpu.memory_space<vmem>>, vector<2x8xf32>,
    %c4_204 = arith.constant 4 : index
    %c16_205 = arith.constant 16 : index
    %146 = vector.load %arg17[%c4_204, %c16_205] : memref<8x32xf32, #tpu.memory_space<vmem>>, vector<2x8xf32>
    %c4_206 = arith.constant 4 : index
    %c0_207 = arith.constant 0 : index
    %147 = vector.load %arg20[%c4_206, %c0_207] : memref<8x8xf32, #tpu.memory_space<vmem>>, vector<2x8xf32>
    tpu.vector_store %arg20[%c4_206, %c0_207], %146 {strides = array<i32>} : memref<8x8xf32, #tpu.memory_space<vmem>>, vector<2x8xf32>,
    %c4_208 = arith.constant 4 : index
    %c16_209 = arith.constant 16 : index
    %148 = vector.load %arg18[%c4_208, %c16_209] : memref<8x32xf32, #tpu.memory_space<vmem>>, vector<2x8xf32>
    %c4_210 = arith.constant 4 : index
    %c0_211 = arith.constant 0 : index
    %149 = vector.load %arg21[%c4_210, %c0_211] : memref<8x8xf32, #tpu.memory_space<vmem>>, vector<2x8xf32>
    tpu.vector_store %arg21[%c4_210, %c0_211], %148 {strides = array<i32>} : memref<8x8xf32, #tpu.memory_space<vmem>>, vector<2x8xf32>,
    %c4_212 = arith.constant 4 : index
    %c24_213 = arith.constant 24 : index
    %150 = vector.load %arg16[%c4_212, %c24_213] : memref<8x32xf32, #tpu.memory_space<vmem>>, vector<2x8xf32>
    %c6_214 = arith.constant 6 : index
    %c0_215 = arith.constant 0 : index
    %151 = vector.load %arg19[%c6_214, %c0_215] : memref<8x8xf32, #tpu.memory_space<vmem>>, vector<2x8xf32>
    tpu.vector_store %arg19[%c6_214, %c0_215], %150 {strides = array<i32>} : memref<8x8xf32, #tpu.memory_space<vmem>>, vector<2x8xf32>,
    %c4_216 = arith.constant 4 : index
    %c24_217 = arith.constant 24 : index
    %152 = vector.load %arg17[%c4_216, %c24_217] : memref<8x32xf32, #tpu.memory_space<vmem>>, vector<2x8xf32>
    %c6_218 = arith.constant 6 : index
    %c0_219 = arith.constant 0 : index
    %153 = vector.load %arg20[%c6_218, %c0_219] : memref<8x8xf32, #tpu.memory_space<vmem>>, vector<2x8xf32>
    tpu.vector_store %arg20[%c6_218, %c0_219], %152 {strides = array<i32>} : memref<8x8xf32, #tpu.memory_space<vmem>>, vector<2x8xf32>,
    %c4_220 = arith.constant 4 : index
    %c24_221 = arith.constant 24 : index
    %154 = vector.load %arg18[%c4_220, %c24_221] : memref<8x32xf32, #tpu.memory_space<vmem>>, vector<2x8xf32>
    %c6_222 = arith.constant 6 : index
    %c0_223 = arith.constant 0 : index
    %155 = vector.load %arg21[%c6_222, %c0_223] : memref<8x8xf32, #tpu.memory_space<vmem>>, vector<2x8xf32>
    tpu.vector_store %arg21[%c6_222, %c0_223], %154 {strides = array<i32>} : memref<8x8xf32, #tpu.memory_space<vmem>>, vector<2x8xf32>,
    %c0_224 = arith.constant 0 : index
    %c0_225 = arith.constant 0 : index
    %156 = vector.load %arg19[%c0_224, %c0_225] : memref<8x8xf32, #tpu.memory_space<vmem>>, vector<8x8xf32>
    %157 = arith.truncf %156 : vector<8x8xf32> to vector<8x8xbf16>
    %c0_226 = arith.constant 0 : index
    %c0_227 = arith.constant 0 : index
    %158 = vector.load %arg20[%c0_226, %c0_227] : memref<8x8xf32, #tpu.memory_space<vmem>>, vector<8x8xf32>
    %159 = arith.truncf %158 : vector<8x8xf32> to vector<8x8xbf16>
    %cst_228 = arith.constant dense<0.000000e+00> : vector<8x8xf32>
    %160 = tpu.matmul %157, %159, %cst_228 {dimension_numbers = #tpu.dot_dimension_numbers<[1], [1], [0], [0], [0, 0, 1, 0], [], []>} : vector<8x8xbf16>, vector<8x8xbf16>, vector<8x8xf32> -> vector<8x8xf32>
    %cst_229 = arith.constant dense<0xFF800000> : vector<8xf32>
    %161 = vector.multi_reduction <maximumf>, %160, %cst_229 [1] : vector<8x8xf32> to vector<8xf32>
    %162 = vector.shape_cast %161 : vector<8xf32> to vector<8x1xf32>
    %163 = vector.broadcast %162 : vector<8x1xf32> to vector<8x8xf32>
    %164 = arith.subf %160, %163 : vector<8x8xf32>
    %165 = math.exp %164 : vector<8x8xf32>
    %cst_230 = arith.constant dense<0.000000e+00> : vector<8xf32>
    %166 = vector.multi_reduction <add>, %165, %cst_230 [1] : vector<8x8xf32> to vector<8xf32>
    %167 = vector.shape_cast %166 : vector<8xf32> to vector<8x1xf32>
    %168 = vector.broadcast %167 : vector<8x1xf32> to vector<8x8xf32>
    %169 = arith.divf %165, %168 : vector<8x8xf32>
    %170 = arith.truncf %169 : vector<8x8xf32> to vector<8x8xbf16>
    %c0_231 = arith.constant 0 : index
    %c0_232 = arith.constant 0 : index
    %171 = vector.load %arg21[%c0_231, %c0_232] : memref<8x8xf32, #tpu.memory_space<vmem>>, vector<8x8xf32>
    %172 = arith.truncf %171 : vector<8x8xf32> to vector<8x8xbf16>
    %cst_233 = arith.constant dense<0.000000e+00> : vector<8x8xf32>
    %173 = tpu.matmul %170, %172, %cst_233 {dimension_numbers = #tpu.dot_dimension_numbers<[1], [0], [0], [1], [0, 0, 1, 1], [], []>} : vector<8x8xbf16>, vector<8x8xbf16>, vector<8x8xf32> -> vector<8x8xf32>
    %c0_234 = arith.constant 0 : index
    %c0_235 = arith.constant 0 : index
    %174 = vector.load %arg22[%c0_234, %c0_235] : memref<8x8xf32, #tpu.memory_space<vmem>>, vector<8x8xf32>
    tpu.vector_store %arg22[%c0_234, %c0_235], %173 {strides = array<i32>} : memref<8x8xf32, #tpu.memory_space<vmem>>, vector<8x8xf32>,
    %c0_236 = arith.constant 0 : index
    %c0_237 = arith.constant 0 : index
    %175 = vector.load %arg22[%c0_236, %c0_237] : memref<8x8xf32, #tpu.memory_space<vmem>>, vector<2x8xf32>
    %c4_238 = arith.constant 4 : index
    %c0_239 = arith.constant 0 : index
    %176 = vector.load %arg23[%c4_238, %c0_239] : memref<8x32xf32, #tpu.memory_space<vmem>>, vector<2x8xf32>
    tpu.vector_store %arg23[%c4_238, %c0_239], %175 {strides = array<i32>} : memref<8x32xf32, #tpu.memory_space<vmem>>, vector<2x8xf32>,
    %c2_240 = arith.constant 2 : index
    %c0_241 = arith.constant 0 : index
    %177 = vector.load %arg22[%c2_240, %c0_241] : memref<8x8xf32, #tpu.memory_space<vmem>>, vector<2x8xf32>
    %c4_242 = arith.constant 4 : index
    %c8_243 = arith.constant 8 : index
    %178 = vector.load %arg23[%c4_242, %c8_243] : memref<8x32xf32, #tpu.memory_space<vmem>>, vector<2x8xf32>
    tpu.vector_store %arg23[%c4_242, %c8_243], %177 {strides = array<i32>} : memref<8x32xf32, #tpu.memory_space<vmem>>, vector<2x8xf32>,
    %c4_244 = arith.constant 4 : index
    %c0_245 = arith.constant 0 : index
    %179 = vector.load %arg22[%c4_244, %c0_245] : memref<8x8xf32, #tpu.memory_space<vmem>>, vector<2x8xf32>
    %c4_246 = arith.constant 4 : index
    %c16_247 = arith.constant 16 : index
    %180 = vector.load %arg23[%c4_246, %c16_247] : memref<8x32xf32, #tpu.memory_space<vmem>>, vector<2x8xf32>
    tpu.vector_store %arg23[%c4_246, %c16_247], %179 {strides = array<i32>} : memref<8x32xf32, #tpu.memory_space<vmem>>, vector<2x8xf32>,
    %c6_248 = arith.constant 6 : index
    %c0_249 = arith.constant 0 : index
    %181 = vector.load %arg22[%c6_248, %c0_249] : memref<8x8xf32, #tpu.memory_space<vmem>>, vector<2x8xf32>
    %c4_250 = arith.constant 4 : index
    %c24_251 = arith.constant 24 : index
    %182 = vector.load %arg23[%c4_250, %c24_251] : memref<8x32xf32, #tpu.memory_space<vmem>>, vector<2x8xf32>
    tpu.vector_store %arg23[%c4_250, %c24_251], %181 {strides = array<i32>} : memref<8x32xf32, #tpu.memory_space<vmem>>, vector<2x8xf32>,
    %c2_252 = arith.constant 2 : index
    %c0_253 = arith.constant 0 : index
    %c0_254 = arith.constant 0 : index
    %183 = vector.load %arg15[%c2_252, %c0_253, %c0_254] : memref<4x8x8xf32, #tpu.memory_space<vmem>>, vector<1x8x8xf32>
    %184 = vector.shape_cast %183 : vector<1x8x8xf32> to vector<8x8xf32>
    %185 = vector.shape_cast %169 : vector<8x8xf32> to vector<1x8x8xf32>
    tpu.vector_store %arg15[%c2_252, %c0_253, %c0_254], %185 {strides = array<i32>} : memref<4x8x8xf32, #tpu.memory_space<vmem>>, vector<1x8x8xf32>,
    %c6_255 = arith.constant 6 : index
    %c0_256 = arith.constant 0 : index
    %186 = vector.load %arg16[%c6_255, %c0_256] : memref<8x32xf32, #tpu.memory_space<vmem>>, vector<2x8xf32>
    %c0_257 = arith.constant 0 : index
    %c0_258 = arith.constant 0 : index
    %187 = vector.load %arg19[%c0_257, %c0_258] : memref<8x8xf32, #tpu.memory_space<vmem>>, vector<2x8xf32>
    tpu.vector_store %arg19[%c0_257, %c0_258], %186 {strides = array<i32>} : memref<8x8xf32, #tpu.memory_space<vmem>>, vector<2x8xf32>,
    %c6_259 = arith.constant 6 : index
    %c0_260 = arith.constant 0 : index
    %188 = vector.load %arg17[%c6_259, %c0_260] : memref<8x32xf32, #tpu.memory_space<vmem>>, vector<2x8xf32>
    %c0_261 = arith.constant 0 : index
    %c0_262 = arith.constant 0 : index
    %189 = vector.load %arg20[%c0_261, %c0_262] : memref<8x8xf32, #tpu.memory_space<vmem>>, vector<2x8xf32>
    tpu.vector_store %arg20[%c0_261, %c0_262], %188 {strides = array<i32>} : memref<8x8xf32, #tpu.memory_space<vmem>>, vector<2x8xf32>,
    %c6_263 = arith.constant 6 : index
    %c0_264 = arith.constant 0 : index
    %190 = vector.load %arg18[%c6_263, %c0_264] : memref<8x32xf32, #tpu.memory_space<vmem>>, vector<2x8xf32>
    %c0_265 = arith.constant 0 : index
    %c0_266 = arith.constant 0 : index
    %191 = vector.load %arg21[%c0_265, %c0_266] : memref<8x8xf32, #tpu.memory_space<vmem>>, vector<2x8xf32>
    tpu.vector_store %arg21[%c0_265, %c0_266], %190 {strides = array<i32>} : memref<8x8xf32, #tpu.memory_space<vmem>>, vector<2x8xf32>,
    %c6_267 = arith.constant 6 : index
    %c8_268 = arith.constant 8 : index
    %192 = vector.load %arg16[%c6_267, %c8_268] : memref<8x32xf32, #tpu.memory_space<vmem>>, vector<2x8xf32>
    %c2_269 = arith.constant 2 : index
    %c0_270 = arith.constant 0 : index
    %193 = vector.load %arg19[%c2_269, %c0_270] : memref<8x8xf32, #tpu.memory_space<vmem>>, vector<2x8xf32>
    tpu.vector_store %arg19[%c2_269, %c0_270], %192 {strides = array<i32>} : memref<8x8xf32, #tpu.memory_space<vmem>>, vector<2x8xf32>,
    %c6_271 = arith.constant 6 : index
    %c8_272 = arith.constant 8 : index
    %194 = vector.load %arg17[%c6_271, %c8_272] : memref<8x32xf32, #tpu.memory_space<vmem>>, vector<2x8xf32>
    %c2_273 = arith.constant 2 : index
    %c0_274 = arith.constant 0 : index
    %195 = vector.load %arg20[%c2_273, %c0_274] : memref<8x8xf32, #tpu.memory_space<vmem>>, vector<2x8xf32>
    tpu.vector_store %arg20[%c2_273, %c0_274], %194 {strides = array<i32>} : memref<8x8xf32, #tpu.memory_space<vmem>>, vector<2x8xf32>,
    %c6_275 = arith.constant 6 : index
    %c8_276 = arith.constant 8 : index
    %196 = vector.load %arg18[%c6_275, %c8_276] : memref<8x32xf32, #tpu.memory_space<vmem>>, vector<2x8xf32>
    %c2_277 = arith.constant 2 : index
    %c0_278 = arith.constant 0 : index
    %197 = vector.load %arg21[%c2_277, %c0_278] : memref<8x8xf32, #tpu.memory_space<vmem>>, vector<2x8xf32>
    tpu.vector_store %arg21[%c2_277, %c0_278], %196 {strides = array<i32>} : memref<8x8xf32, #tpu.memory_space<vmem>>, vector<2x8xf32>,
    %c6_279 = arith.constant 6 : index
    %c16_280 = arith.constant 16 : index
    %198 = vector.load %arg16[%c6_279, %c16_280] : memref<8x32xf32, #tpu.memory_space<vmem>>, vector<2x8xf32>
    %c4_281 = arith.constant 4 : index
    %c0_282 = arith.constant 0 : index
    %199 = vector.load %arg19[%c4_281, %c0_282] : memref<8x8xf32, #tpu.memory_space<vmem>>, vector<2x8xf32>
    tpu.vector_store %arg19[%c4_281, %c0_282], %198 {strides = array<i32>} : memref<8x8xf32, #tpu.memory_space<vmem>>, vector<2x8xf32>,
    %c6_283 = arith.constant 6 : index
    %c16_284 = arith.constant 16 : index
    %200 = vector.load %arg17[%c6_283, %c16_284] : memref<8x32xf32, #tpu.memory_space<vmem>>, vector<2x8xf32>
    %c4_285 = arith.constant 4 : index
    %c0_286 = arith.constant 0 : index
    %201 = vector.load %arg20[%c4_285, %c0_286] : memref<8x8xf32, #tpu.memory_space<vmem>>, vector<2x8xf32>
    tpu.vector_store %arg20[%c4_285, %c0_286], %200 {strides = array<i32>} : memref<8x8xf32, #tpu.memory_space<vmem>>, vector<2x8xf32>,
    %c6_287 = arith.constant 6 : index
    %c16_288 = arith.constant 16 : index
    %202 = vector.load %arg18[%c6_287, %c16_288] : memref<8x32xf32, #tpu.memory_space<vmem>>, vector<2x8xf32>
    %c4_289 = arith.constant 4 : index
    %c0_290 = arith.constant 0 : index
    %203 = vector.load %arg21[%c4_289, %c0_290] : memref<8x8xf32, #tpu.memory_space<vmem>>, vector<2x8xf32>
    tpu.vector_store %arg21[%c4_289, %c0_290], %202 {strides = array<i32>} : memref<8x8xf32, #tpu.memory_space<vmem>>, vector<2x8xf32>,
    %c6_291 = arith.constant 6 : index
    %c24_292 = arith.constant 24 : index
    %204 = vector.load %arg16[%c6_291, %c24_292] : memref<8x32xf32, #tpu.memory_space<vmem>>, vector<2x8xf32>
    %c6_293 = arith.constant 6 : index
    %c0_294 = arith.constant 0 : index
    %205 = vector.load %arg19[%c6_293, %c0_294] : memref<8x8xf32, #tpu.memory_space<vmem>>, vector<2x8xf32>
    tpu.vector_store %arg19[%c6_293, %c0_294], %204 {strides = array<i32>} : memref<8x8xf32, #tpu.memory_space<vmem>>, vector<2x8xf32>,
    %c6_295 = arith.constant 6 : index
    %c24_296 = arith.constant 24 : index
    %206 = vector.load %arg17[%c6_295, %c24_296] : memref<8x32xf32, #tpu.memory_space<vmem>>, vector<2x8xf32>
    %c6_297 = arith.constant 6 : index
    %c0_298 = arith.constant 0 : index
    %207 = vector.load %arg20[%c6_297, %c0_298] : memref<8x8xf32, #tpu.memory_space<vmem>>, vector<2x8xf32>
    tpu.vector_store %arg20[%c6_297, %c0_298], %206 {strides = array<i32>} : memref<8x8xf32, #tpu.memory_space<vmem>>, vector<2x8xf32>,
    %c6_299 = arith.constant 6 : index
    %c24_300 = arith.constant 24 : index
    %208 = vector.load %arg18[%c6_299, %c24_300] : memref<8x32xf32, #tpu.memory_space<vmem>>, vector<2x8xf32>
    %c6_301 = arith.constant 6 : index
    %c0_302 = arith.constant 0 : index
    %209 = vector.load %arg21[%c6_301, %c0_302] : memref<8x8xf32, #tpu.memory_space<vmem>>, vector<2x8xf32>
    tpu.vector_store %arg21[%c6_301, %c0_302], %208 {strides = array<i32>} : memref<8x8xf32, #tpu.memory_space<vmem>>, vector<2x8xf32>,
    %c0_303 = arith.constant 0 : index
    %c0_304 = arith.constant 0 : index
    %210 = vector.load %arg19[%c0_303, %c0_304] : memref<8x8xf32, #tpu.memory_space<vmem>>, vector<8x8xf32>
    %211 = arith.truncf %210 : vector<8x8xf32> to vector<8x8xbf16>
    %c0_305 = arith.constant 0 : index
    %c0_306 = arith.constant 0 : index
    %212 = vector.load %arg20[%c0_305, %c0_306] : memref<8x8xf32, #tpu.memory_space<vmem>>, vector<8x8xf32>
    %213 = arith.truncf %212 : vector<8x8xf32> to vector<8x8xbf16>
    %cst_307 = arith.constant dense<0.000000e+00> : vector<8x8xf32>
    %214 = tpu.matmul %211, %213, %cst_307 {dimension_numbers = #tpu.dot_dimension_numbers<[1], [1], [0], [0], [0, 0, 1, 0], [], []>} : vector<8x8xbf16>, vector<8x8xbf16>, vector<8x8xf32> -> vector<8x8xf32>
    %cst_308 = arith.constant dense<0xFF800000> : vector<8xf32>
    %215 = vector.multi_reduction <maximumf>, %214, %cst_308 [1] : vector<8x8xf32> to vector<8xf32>
    %216 = vector.shape_cast %215 : vector<8xf32> to vector<8x1xf32>
    %217 = vector.broadcast %216 : vector<8x1xf32> to vector<8x8xf32>
    %218 = arith.subf %214, %217 : vector<8x8xf32>
    %219 = math.exp %218 : vector<8x8xf32>
    %cst_309 = arith.constant dense<0.000000e+00> : vector<8xf32>
    %220 = vector.multi_reduction <add>, %219, %cst_309 [1] : vector<8x8xf32> to vector<8xf32>
    %221 = vector.shape_cast %220 : vector<8xf32> to vector<8x1xf32>
    %222 = vector.broadcast %221 : vector<8x1xf32> to vector<8x8xf32>
    %223 = arith.divf %219, %222 : vector<8x8xf32>
    %224 = arith.truncf %223 : vector<8x8xf32> to vector<8x8xbf16>
    %c0_310 = arith.constant 0 : index
    %c0_311 = arith.constant 0 : index
    %225 = vector.load %arg21[%c0_310, %c0_311] : memref<8x8xf32, #tpu.memory_space<vmem>>, vector<8x8xf32>
    %226 = arith.truncf %225 : vector<8x8xf32> to vector<8x8xbf16>
    %cst_312 = arith.constant dense<0.000000e+00> : vector<8x8xf32>
    %227 = tpu.matmul %224, %226, %cst_312 {dimension_numbers = #tpu.dot_dimension_numbers<[1], [0], [0], [1], [0, 0, 1, 1], [], []>} : vector<8x8xbf16>, vector<8x8xbf16>, vector<8x8xf32> -> vector<8x8xf32>
    %c0_313 = arith.constant 0 : index
    %c0_314 = arith.constant 0 : index
    %228 = vector.load %arg22[%c0_313, %c0_314] : memref<8x8xf32, #tpu.memory_space<vmem>>, vector<8x8xf32>
    tpu.vector_store %arg22[%c0_313, %c0_314], %227 {strides = array<i32>} : memref<8x8xf32, #tpu.memory_space<vmem>>, vector<8x8xf32>,
    %c0_315 = arith.constant 0 : index
    %c0_316 = arith.constant 0 : index
    %229 = vector.load %arg22[%c0_315, %c0_316] : memref<8x8xf32, #tpu.memory_space<vmem>>, vector<2x8xf32>
    %c6_317 = arith.constant 6 : index
    %c0_318 = arith.constant 0 : index
    %230 = vector.load %arg23[%c6_317, %c0_318] : memref<8x32xf32, #tpu.memory_space<vmem>>, vector<2x8xf32>
    tpu.vector_store %arg23[%c6_317, %c0_318], %229 {strides = array<i32>} : memref<8x32xf32, #tpu.memory_space<vmem>>, vector<2x8xf32>,
    %c2_319 = arith.constant 2 : index
    %c0_320 = arith.constant 0 : index
    %231 = vector.load %arg22[%c2_319, %c0_320] : memref<8x8xf32, #tpu.memory_space<vmem>>, vector<2x8xf32>
    %c6_321 = arith.constant 6 : index
    %c8_322 = arith.constant 8 : index
    %232 = vector.load %arg23[%c6_321, %c8_322] : memref<8x32xf32, #tpu.memory_space<vmem>>, vector<2x8xf32>
    tpu.vector_store %arg23[%c6_321, %c8_322], %231 {strides = array<i32>} : memref<8x32xf32, #tpu.memory_space<vmem>>, vector<2x8xf32>,
    %c4_323 = arith.constant 4 : index
    %c0_324 = arith.constant 0 : index
    %233 = vector.load %arg22[%c4_323, %c0_324] : memref<8x8xf32, #tpu.memory_space<vmem>>, vector<2x8xf32>
    %c6_325 = arith.constant 6 : index
    %c16_326 = arith.constant 16 : index
    %234 = vector.load %arg23[%c6_325, %c16_326] : memref<8x32xf32, #tpu.memory_space<vmem>>, vector<2x8xf32>
    tpu.vector_store %arg23[%c6_325, %c16_326], %233 {strides = array<i32>} : memref<8x32xf32, #tpu.memory_space<vmem>>, vector<2x8xf32>,
    %c6_327 = arith.constant 6 : index
    %c0_328 = arith.constant 0 : index
    %235 = vector.load %arg22[%c6_327, %c0_328] : memref<8x8xf32, #tpu.memory_space<vmem>>, vector<2x8xf32>
    %c6_329 = arith.constant 6 : index
    %c24_330 = arith.constant 24 : index
    %236 = vector.load %arg23[%c6_329, %c24_330] : memref<8x32xf32, #tpu.memory_space<vmem>>, vector<2x8xf32>
    tpu.vector_store %arg23[%c6_329, %c24_330], %235 {strides = array<i32>} : memref<8x32xf32, #tpu.memory_space<vmem>>, vector<2x8xf32>,
    %c3 = arith.constant 3 : index
    %c0_331 = arith.constant 0 : index
    %c0_332 = arith.constant 0 : index
    %237 = vector.load %arg15[%c3, %c0_331, %c0_332] : memref<4x8x8xf32, #tpu.memory_space<vmem>>, vector<1x8x8xf32>
    %238 = vector.shape_cast %237 : vector<1x8x8xf32> to vector<8x8xf32>
    %239 = vector.shape_cast %223 : vector<8x8xf32> to vector<1x8x8xf32>
    tpu.vector_store %arg15[%c3, %c0_331, %c0_332], %239 {strides = array<i32>} : memref<4x8x8xf32, #tpu.memory_space<vmem>>, vector<1x8x8xf32>,
    %c0_333 = arith.constant 0 : index
    %c0_334 = arith.constant 0 : index
    %240 = vector.load %arg23[%c0_333, %c0_334] : memref<8x32xf32, #tpu.memory_space<vmem>>, vector<8x32xf32>
    %241 = arith.truncf %240 : vector<8x32xf32> to vector<8x32xbf16>
    %c0_335 = arith.constant 0 : index
    %c0_336 = arith.constant 0 : index
    %242 = vector.load %arg10[%c0_335, %c0_336] : memref<32x32xbf16, #tpu.memory_space<vmem>>, vector<32x32xbf16>
    %cst_337 = arith.constant dense<0.000000e+00> : vector<8x32xf32>
    %243 = tpu.matmul %241, %242, %cst_337 {dimension_numbers = #tpu.dot_dimension_numbers<[1], [0], [0], [1], [0, 0, 1, 1], [], []>} : vector<8x32xbf16>, vector<32x32xbf16>, vector<8x32xf32> -> vector<8x32xf32>
    %c0_338 = arith.constant 0 : index
    %c0_339 = arith.constant 0 : index
    %244 = vector.load %arg11[%c0_338, %c0_339] : memref<1x32xf32, #tpu.memory_space<vmem>>, vector<1x32xf32>
    %245 = vector.broadcast %244 : vector<1x32xf32> to vector<8x32xf32>
    %246 = arith.addf %243, %245 : vector<8x32xf32>
    %247 = arith.addf %0, %246 : vector<8x32xf32>
    %cst_340 = arith.constant dense<0.000000e+00> : vector<8xf32>
    %248 = vector.multi_reduction <add>, %247, %cst_340 [1] : vector<8x32xf32> to vector<8xf32>
    %249 = vector.shape_cast %248 : vector<8xf32> to vector<8x1xf32>
    %cst_341 = arith.constant 3.125000e-02 : f32
    %250 = vector.broadcast %cst_341 : f32 to vector<8x1xf32>
    %251 = arith.mulf %249, %250 : vector<8x1xf32>
    %252 = arith.mulf %247, %247 : vector<8x32xf32>
    %cst_342 = arith.constant dense<0.000000e+00> : vector<8xf32>
    %253 = vector.multi_reduction <add>, %252, %cst_342 [1] : vector<8x32xf32> to vector<8xf32>
    %254 = vector.shape_cast %253 : vector<8xf32> to vector<8x1xf32>
    %cst_343 = arith.constant 3.125000e-02 : f32
    %255 = vector.broadcast %cst_343 : f32 to vector<8x1xf32>
    %256 = arith.mulf %254, %255 : vector<8x1xf32>
    %257 = arith.mulf %251, %251 : vector<8x1xf32>
    %258 = arith.subf %256, %257 : vector<8x1xf32>
    %259 = vector.broadcast %251 : vector<8x1xf32> to vector<8x32xf32>
    %260 = arith.subf %247, %259 : vector<8x32xf32>
    %cst_344 = arith.constant 9.99999974E-6 : f32
    %261 = vector.broadcast %cst_344 : f32 to vector<8x1xf32>
    %262 = arith.addf %258, %261 : vector<8x1xf32>
    %263 = math.rsqrt %262 : vector<8x1xf32>
    %264 = vector.broadcast %263 : vector<8x1xf32> to vector<8x32xf32>
    %265 = arith.mulf %260, %264 : vector<8x32xf32>
    %c0_345 = arith.constant 0 : index
    %c0_346 = arith.constant 0 : index
    %266 = vector.load %arg12[%c0_345, %c0_346] : memref<1x32xf32, #tpu.memory_space<vmem>>, vector<1x32xf32>
    %267 = vector.broadcast %266 : vector<1x32xf32> to vector<8x32xf32>
    %268 = arith.mulf %265, %267 : vector<8x32xf32>
    %c0_347 = arith.constant 0 : index
    %c0_348 = arith.constant 0 : index
    %269 = vector.load %arg13[%c0_347, %c0_348] : memref<1x32xf32, #tpu.memory_space<vmem>>, vector<1x32xf32>
    %270 = vector.broadcast %269 : vector<1x32xf32> to vector<8x32xf32>
    %271 = arith.addf %268, %270 : vector<8x32xf32>
    %c0_349 = arith.constant 0 : index
    %c0_350 = arith.constant 0 : index
    %272 = vector.load %arg14[%c0_349, %c0_350] : memref<8x32xf32, #tpu.memory_space<vmem>>, vector<8x32xf32>
    tpu.vector_store %arg14[%c0_349, %c0_350], %271 {strides = array<i32>} : memref<8x32xf32, #tpu.memory_space<vmem>>, vector<8x32xf32>,
    return
  }
  func.func @transform_0(%arg0: i32) -> (i32, i32) {
    %c0_i32 = arith.constant 0 : i32
    %c0_i32_0 = arith.constant 0 : i32
    return %arg0, %c0_i32 : i32, i32
  }
  func.func @transform_1(%arg0: i32) -> (i32, i32) {
    %c0_i32 = arith.constant 0 : i32
    %c0_i32_0 = arith.constant 0 : i32
    return %arg0, %c0_i32 : i32, i32
  }
  func.func @transform_2(%arg0: i32) -> (i32, i32) {
    %c0_i32 = arith.constant 0 : i32
    %c0_i32_0 = arith.constant 0 : i32
    return %arg0, %c0_i32 : i32, i32
  }
  func.func @transform_3(%arg0: i32) -> (i32, i32) {
    %c0_i32 = arith.constant 0 : i32
    %c0_i32_0 = arith.constant 0 : i32
    %c0_i32_1 = arith.constant 0 : i32
    return %c0_i32, %c0_i32_0 : i32, i32
  }
  func.func @transform_4(%arg0: i32) -> (i32, i32) {
    %c0_i32 = arith.constant 0 : i32
    %c0_i32_0 = arith.constant 0 : i32
    %c0_i32_1 = arith.constant 0 : i32
    return %c0_i32, %c0_i32_0 : i32, i32
  }
  func.func @transform_5(%arg0: i32) -> (i32, i32) {
    %c0_i32 = arith.constant 0 : i32
    %c0_i32_0 = arith.constant 0 : i32
    %c0_i32_1 = arith.constant 0 : i32
    return %c0_i32, %c0_i32_0 : i32, i32
  }
  func.func @transform_6(%arg0: i32) -> (i32, i32) {
    %c0_i32 = arith.constant 0 : i32
    %c0_i32_0 = arith.constant 0 : i32
    %c0_i32_1 = arith.constant 0 : i32
    return %c0_i32, %c0_i32_0 : i32, i32
  }
  func.func @transform_7(%arg0: i32) -> (i32, i32) {
    %c0_i32 = arith.constant 0 : i32
    %c0_i32_0 = arith.constant 0 : i32
    %c0_i32_1 = arith.constant 0 : i32
    return %c0_i32, %c0_i32_0 : i32, i32
  }
  func.func @transform_8(%arg0: i32) -> (i32, i32) {
    %c0_i32 = arith.constant 0 : i32
    %c0_i32_0 = arith.constant 0 : i32
    %c0_i32_1 = arith.constant 0 : i32
    return %c0_i32, %c0_i32_0 : i32, i32
  }
  func.func @transform_9(%arg0: i32) -> (i32, i32) {
    %c0_i32 = arith.constant 0 : i32
    %c0_i32_0 = arith.constant 0 : i32
    %c0_i32_1 = arith.constant 0 : i32
    return %c0_i32, %c0_i32_0 : i32, i32
  }
  func.func @transform_10(%arg0: i32) -> (i32, i32) {
    %c0_i32 = arith.constant 0 : i32
    %c0_i32_0 = arith.constant 0 : i32
    %c0_i32_1 = arith.constant 0 : i32
    return %c0_i32, %c0_i32_0 : i32, i32
  }
  func.func @transform_11(%arg0: i32) -> (i32, i32) {
    %c0_i32 = arith.constant 0 : i32
    %c0_i32_0 = arith.constant 0 : i32
    %c0_i32_1 = arith.constant 0 : i32
    return %c0_i32, %c0_i32_0 : i32, i32
  }
  func.func @transform_12(%arg0: i32) -> (i32, i32) {
    %c0_i32 = arith.constant 0 : i32
    %c0_i32_0 = arith.constant 0 : i32
    %c0_i32_1 = arith.constant 0 : i32
    return %c0_i32, %c0_i32_0 : i32, i32
  }
  func.func @transform_13(%arg0: i32) -> (i32, i32) {
    %c0_i32 = arith.constant 0 : i32
    %c0_i32_0 = arith.constant 0 : i32
    return %arg0, %c0_i32 : i32, i32
  }
  func.func @transform_14(%arg0: i32) -> (i32, i32, i32) {
    %c0_i32 = arith.constant 0 : i32
    %c0_i32_0 = arith.constant 0 : i32
    %c0_i32_1 = arith.constant 0 : i32
    return %arg0, %c0_i32, %c0_i32_0 : i32, i32, i32
  }
}

</mosaic_0001>

<bundles_post_ra>
// kernel: tpu_custom_call.1
= control target key start
LH: loop header
LB: loop body
LE: loop exit
PB: predicated region body
PF: predicated region fallthrough
CT: control target
= control target key end

     0   :  { %s3184_s0 = inlined_call_operand.hbm [shape: f32[16,32], index: 0, kind: input, shape index: {}]   ;;  %s3185_s1 = inlined_call_operand.hbm [shape: f32[16,32], index: 1, kind: input, shape index: {}]   ;;  %s3186_s2 = inlined_call_operand.hbm [shape: f32[16,32], index: 2, kind: input, shape index: {}]   ;;  %s3187_s3 = inlined_call_operand.hbm [shape: bf16[32,32], index: 3, kind: input, shape index: {}]   ;;  %s3188_s4 = inlined_call_operand.hbm [shape: bf16[32,32], index: 4, kind: input, shape index: {}]   ;;  %s3189_s5 = inlined_call_operand.vmem [shape: bf16[32,32], index: 5, kind: input, shape index: {}]   ;;  %s3190_s6 = inlined_call_operand.vmem [shape: f32[1,32], index: 6, kind: input, shape index: {}]   ;;  %s3191_s7 = inlined_call_operand.vmem [shape: f32[1,32], index: 7, kind: input, shape index: {}]   ;;  %s3192_s8 = inlined_call_operand.hbm [shape: f32[1,32], index: 8, kind: input, shape index: {}]   ;;  %s3193_s9 = inlined_call_operand.vmem [shape: bf16[32,32], index: 9, kind: input, shape index: {}]   ;;  %s3194_s10 = inlined_call_operand.vmem [shape: f32[1,32], index: 10, kind: input, shape index: {}]   ;;  %s3195_s11 = inlined_call_operand.vmem [shape: f32[1,32], index: 11, kind: input, shape index: {}]   ;;  %s3196_s12 = inlined_call_operand.vmem [shape: f32[1,32], index: 12, kind: input, shape index: {}]   ;;  %s3197_s13 = inlined_call_operand.hbm [shape: f32[16,32], index: 13, kind: output, shape index: {0}]   ;;  %s3198_s14 = inlined_call_operand.hbm [shape: f32[8,8,8], index: 14, kind: output, shape index: {1}]  }
   0x1   :  { %3225 = sst [smem:[#allocation36_spill]] %s3185_s1 }
   0x2   :  { %3226 = sst [smem:[#allocation37_spill]] %s3187_s3 }
   0x3   :  { %3227 = sst [smem:[#allocation38_spill]] %s3189_s5 }
   0x4   :  { %3228 = sst [smem:[#allocation39_spill]] %s3193_s9 }
   0x5   :  { %3229 = sst [smem:[#allocation40_spill]] %s3194_s10 }
   0x6   :  { %3230 = sst [smem:[#allocation41_spill]] %s3195_s11 }
   0x7   :  { %3231 = sst [smem:[#allocation42_spill]] %s3196_s12 }
   0x8   :  { %3232 = sst [smem:[#allocation43_spill]] %s3197_s13 }
   0x9   :  { %3233 = sst [smem:[#allocation44_spill]] %s3198_s14 }
   0xa   :  { %20 = vsyncpa [#allocation11], 0 }
   0xb   :  { %22 = vsyncpa [#allocation11 + $0x1], 0 }
   0xc   :  { %23 = vsyncpa [#allocation14], 0 }
   0xd   :  { %25 = vsyncpa [#allocation14 + $0x1], 0 }
   0xe   :  { %26 = vsyncpa [#allocation17], 0 }
   0xf   :  { %27 = vsyncpa [#allocation20], 0 }
  0x10   :  { %28 = vsyncpa [#allocation12], 0 }
  0x11   :  { %30 = vsyncpa [#allocation12 + $0x1], 0 }
  0x12   :  { %31 = vsyncpa [#allocation23], 0 }
  0x13   :  { %33 = vsyncpa [#allocation23 + $0x1], 0  ;;  %s2579_s29 = smov 0   ;;  %s2581_s30 = smov 0  }
  0x14   :  { %s2583_s15 = smov 0   ;;  %s2585_s16 = smov 0  }
  0x15 LB: > { %3234 = sst [smem:[#allocation30_spill]] %s2471_s29  ;;  %s2600_s17 = sadd.s32 4294967295, %s2483_s16   ;;  %s2483_s16 = sphi %s2585_s16, %s3279_s16   ;;  %s2479_s15 = sphi %s2583_s15, %s3283_s15   ;;  %s2475_s30 = sphi %s2581_s30, %s3282_s30   ;;  %s2471_s29 = sphi %s2579_s29, %s3281_s29  }
  0x16   : > { %3235 = sst [smem:[#allocation31_spill]] %s2483_s16  ;;  %s1904_s18 = sadd.s32 4294967294, %s2483_s16  }
  0x17   : > { %p59_p0 = scmp.ne.s32.totalorder %s2475_s30, %s2471_s29  ;;  %p3202_p1 = scmp.eq.s32.totalorder %s2600_s17, 0 }
  0x18   : > { %p351_p3 = scmp.eq.s32.totalorder %s1904_s18, 1  ;;  %p1905_p5 = scmp.ge.s32.totalorder %s2483_s16, 1 }
  0x19   : > { %p2609_p4 = por %p3202_p1, %p59_p0  ;;  %p384_p7 = scmp.lt.s32.totalorder %s2483_s16, 3 }
  0x1a   : > { %p2614_p6 = por %p351_p3, %p59_p0  ;;  %s2485_s22 = smov [#allocation16]  }
  0x1b   : > { %s3236_s19 = scalar_select %p2609_p4, 1, 0 }
  0x1c   : > { %s3237_s20 = scalar_select %p2614_p6, 1, 0 }
  0x1d   : > { %p2619_p8 = pnand %p1905_p5, %p384_p7  ;;  %s396_s23 = sshll.u32 %s2485_s22, 4  ;;  %s2623_s23 = int_to_ptr.vmem [resolvable:$true] %s396_s23 }
  0x1e   : > { %3238 = sst [smem:[#allocation32_spill]] %s3237_s20  ;;  %s2635_s25 = sadd.s32 1, %s2483_s16  }
  0x1f   : > { %s3239_s21 = scalar_select %p2619_p8, 1, 0 }
  0x20   : > { %p2092_p9 = pneg %p2619_p8  ;;  %3241 = sst [smem:[#allocation33_spill]] %s2635_s25 }
  0x21   : > { %s46_s26 = sadd.s32 1, %s2479_s15  ;;  %s43_s27 = ssub.s32 %s2483_s16, %s2635_s25 }
  0x22   : > { %p2630_p11 = pnand %p2092_p9, %p3202_p1  ;;  %s3242_s3 = sld [smem:[#allocation37_spill]] }
  0x24   : > { %s3240_s24 = scalar_select %p2630_p11, 1, 0 }
  0x25   : > { %p2648_p13 = pneg %p2630_p11 }
  0x27   : > { %s3243_s13 = scalar_select %p2648_p13, 1, 0 }
  0x28   : > { %s2199_s22 = scalar_lea.hbm %s3242_s3, 256 }
  0x29   : > { %p2200_p12 = scmp.ne.s32.totalorder %s3242_s3, %s2199_s22  ;;  %p2206_p5 = scmp.lt.u32.totalorder %s2199_s22, %s3242_s3 }
  0x2b   : > { %p2202_p0 = pnand %p2648_p13, %p2200_p12 }
  0x2d   : > { %p2203_p3 = pneg %p2202_p0 }
  0x2f   : > { %p2208_p7 = pnand %p2206_p5, %p2203_p3 }
  0x31   : > { %2211 = shalt.err (!%p2208_p7)
}
  0x32   : > { %s2212_s29 = scalar_lea.vmem %s2623_s23, 256  ;;  %p2220_p2 = scmp.lt.s32.totalorder %s2623_s23, %s2623_s23 }
  0x33   : > { %p2213_p9 = scmp.ne.s32.totalorder %s2623_s23, %s2212_s29  ;;  %p2221_p6 = scmp.lt.s32.totalorder %s2212_s29, %s2212_s29 }
  0x35   : > { %p2215_p10 = pnand %p2213_p9, %p2648_p13  ;;  %p2222_p12 = por %p2221_p6, %p2220_p2 }
  0x37   : > { %p2216_p1 = pneg %p2215_p10 }
  0x39   : > { %p2223_p0 = pnand %p2222_p12, %p2216_p1 }
  0x3b   : > { %2226 = shalt.err (!%p2223_p0)
}
  0x3c   : > { %s3206_s20 = smov 64   ;;  %s3207_s11 = smov 4  }
  0x3d   : > { %2095 = dma.hbm_to_vmem [thread:$0]  (!%p2630_p11), %s3242_s3, 256, %s2623_s23, [#allocation17], %s3206_s20, %s3206_s20, %s3207_s11  }
  0x3e   : > { %p44_p1 = scmp.eq.s32.totalorder %s43_s27, 0  ;;  %p53_p2 = scmp.ne.s32.totalorder %s2479_s15, %s2475_s30 }
  0x3f   : > { %p54_p6 = scmp.eq.s32.totalorder %s2483_s16, 0  ;;  %p2122_p10 = scmp.lt.s32.totalorder %s2483_s16, 2 }
  0x40   : > { %s2677_s18 = scalar_select %p44_p1, %s2479_s15, %s46_s26  }
  0x41   : > { %p55_p3 = por %p54_p6, %p53_p2  ;;  %p3245_p5 = scmp.eq.s32.totalorder %s2600_s17, 1 }
  0x42   : > { %3244 = sst [smem:[#allocation34_spill]] %s2677_s18  ;;  %s3208_s29 = sand.u32 1, %s2479_s15  }
  0x43   : > { %p2681_p7 = por %p3245_p5, %p53_p2  ;;  %s2687_s25 = sshll.u32 %s2483_s16, 7 }
  0x44   : > { %s2691_s14 = sshll.u32 %s3208_s29, 3  ;;  %p2693_p9 = pnand %p2122_p10, %p55_p3 }
  0x45   : > { %s3246_s22 = scalar_select %p2681_p7, 1, 0 }
  0x46   : > { %s3248_s23 = scalar_select %p2693_p9, 1, 0 }
  0x47   : > { %3247 = sst [smem:[#allocation35_spill]] %s3246_s22  ;;  %s473_s26 = sand.u32 1, %s2483_s16  }
  0x48   : > { %s3249_s1 = sld [smem:[#allocation36_spill]]  ;;  %s477_s20 = scalar_lea.vmem [#allocation13], %s2691_s14 }
  0x49   : > { %s484_s11 = sshll.u32 %s477_s20, 4  ;;  %s2707_s29 = scalar_lea.sflag [#allocation14], %s473_s26  ;;  %s2705_s11 = int_to_ptr.vmem [resolvable:$true] %s484_s11 }
  0x4a   : > { %p2713_p0 = pneg %p2693_p9 }
  0x4c   : > { %s3250_s18 = scalar_select %p2713_p0, 1, 0 }
  0x4e   : > { %s2702_s28 = scalar_lea.hbm %s3249_s1, %s2687_s25  ;;  %s2232_s16 = scalar_lea.hbm %s3249_s1, 256 }
  0x4f   : > { %s2227_s3 = scalar_lea.hbm %s2702_s28, 128  ;;  %p2233_p6 = scmp.lt.u32.totalorder %s2702_s28, %s3249_s1 }
  0x50   : > { %p2228_p12 = scmp.ne.s32.totalorder %s2702_s28, %s2227_s3  ;;  %p2234_p10 = scmp.lt.u32.totalorder %s2232_s16, %s2227_s3 }
  0x51   : > { %p2236_p5 = scmp.lt.u32.totalorder %s2227_s3, %s2702_s28 }
  0x52   : > { %p2230_p1 = pnand %p2713_p0, %p2228_p12  ;;  %p2235_p3 = por %p2234_p10, %p2233_p6 }
  0x54   : > { %p2231_p2 = pneg %p2230_p1  ;;  %p2237_p7 = por %p2236_p5, %p2235_p3 }
  0x56   : > { %p2238_p4 = pnand %p2237_p7, %p2231_p2 }
  0x58   : > { %2241 = shalt.err (!%p2238_p4)
}
  0x59   : > { %s2242_s26 = scalar_lea.vmem %s2705_s11, 128  ;;  %s2488_s27 = smov [#allocation13]  }
  0x5a   : > { %p2243_p12 = scmp.ne.s32.totalorder %s2705_s11, %s2242_s26  ;;  %s2247_s12 = sshll.u32 %s2488_s27, 4  ;;  %s2248_s12 = int_to_ptr.vmem [resolvable:$false] %s2247_s12 }
  0x5b   : > { %s2249_s22 = scalar_lea.vmem %s2248_s12, 256  ;;  %p2250_p11 = scmp.lt.s32.totalorder %s2705_s11, %s2248_s12 }
  0x5c   : > { %p2245_p1 = pnand %p2243_p12, %p2713_p0  ;;  %p2251_p13 = scmp.lt.s32.totalorder %s2249_s22, %s2242_s26 }
  0x5e   : > { %p2246_p8 = pneg %p2245_p1  ;;  %p2252_p6 = por %p2251_p13, %p2250_p11 }
  0x60   : > { %p2253_p10 = pnand %p2252_p6, %p2246_p8 }
  0x62   : > { %2256 = shalt.err (!%p2253_p10)
}
  0x63   : > { %2108 = dma.hbm_to_vmem [thread:$0]  (!%p2693_p9), %s2702_s28, 128, %s2705_s11, %s2707_s29  }
  0x64   : > { %s2489_s3 = smov [#allocation18]   ;;  %s2490_s20 = smov [#allocation19]  }
  0x65   : > { %s409_s16 = sshll.u32 %s2489_s3, 4  ;;  %s432_s1 = sshll.u32 %s2490_s20, 4  ;;  %s410_s16 = int_to_ptr.vmem [resolvable:$true] %s409_s16  ;;  %s433_s1 = int_to_ptr.vmem [resolvable:$true] %s432_s1 }
  0x66   : > { %s2257_s12 = scalar_lea.hbm %s3188_s4, 256  ;;  %p3251_p8 = scmp.ne.s32.totalorder %s3243_s13, 0 }
  0x67   : > { %p2258_p4 = scmp.ne.s32.totalorder %s3188_s4, %s2257_s12  ;;  %p2264_p7 = scmp.lt.u32.totalorder %s2257_s12, %s3188_s4 }
  0x69   : > { %p2260_p11 = pnand %p2258_p4, %p3251_p8 }
  0x6b   : > { %p2261_p13 = pneg %p2260_p11 }
  0x6d   : > { %p2266_p2 = pnand %p2264_p7, %p2261_p13 }
  0x6f   : > { %2269 = shalt.err (!%p2266_p2)
}
  0x70   : > { %s2270_s11 = scalar_lea.vmem %s410_s16, 256  ;;  %p2278_p1 = scmp.lt.s32.totalorder %s410_s16, %s410_s16 }
  0x71   : > { %p2271_p3 = scmp.ne.s32.totalorder %s410_s16, %s2270_s11  ;;  %p2279_p6 = scmp.lt.s32.totalorder %s2270_s11, %s2270_s11 }
  0x73   : > { %p2273_p5 = pnand %p2271_p3, %p3251_p8  ;;  %p2280_p10 = por %p2279_p6, %p2278_p1 }
  0x75   : > { %p2274_p12 = pneg %p2273_p5 }
  0x77   : > { %p2281_p9 = pnand %p2280_p10, %p2274_p12 }
  0x79   : > { %2284 = shalt.err (!%p2281_p9)
}
  0x7a   : > { %p3252_p4 = scmp.ne.s32.totalorder %s3240_s24, 0  ;;  %s3253_s10 = smov 4  }
  0x7b   : > { %s3254_s28 = smov 64   ;;  %s2285_s27 = scalar_lea.hbm %s3192_s8, 16 }
  0x7c   : > { %2098 = dma.hbm_to_vmem [thread:$0]  (!%p3252_p4), %s3188_s4, 256, %s410_s16, [#allocation17], %s3254_s28, %s3254_s28, %s3253_s10  }
  0x7d   : > { %p2286_p11 = scmp.ne.s32.totalorder %s3192_s8, %s2285_s27  ;;  %p2292_p7 = scmp.lt.u32.totalorder %s2285_s27, %s3192_s8 }
  0x7f   : > { %p2288_p9 = pnand %p2286_p11, %p3251_p8 }
  0x81   : > { %p2289_p13 = pneg %p2288_p9 }
  0x83   : > { %p2294_p2 = pnand %p2292_p7, %p2289_p13 }
  0x85   : > { %2297 = shalt.err (!%p2294_p2)
}
  0x86   : > { %s2298_s5 = scalar_lea.vmem %s433_s1, 16  ;;  %s2305_s16 = scalar_lea.vmem %s433_s1, 32 }
  0x87   : > { %p2299_p3 = scmp.ne.s32.totalorder %s433_s1, %s2298_s5  ;;  %p2306_p1 = scmp.lt.s32.totalorder %s433_s1, %s433_s1 }
  0x88   : > { %p2307_p6 = scmp.lt.s32.totalorder %s2305_s16, %s2298_s5 }
  0x89   : > { %p2301_p5 = pnand %p2299_p3, %p3251_p8 }
  0x8a   : > { %p2308_p10 = por %p2307_p6, %p2306_p1 }
  0x8b   : > { %p2302_p12 = pneg %p2301_p5 }
  0x8d   : > { %p2309_p0 = pnand %p2308_p10, %p2302_p12 }
  0x8f   : > { %2312 = shalt.err (!%p2309_p0)
}
  0x90   : > { %2101 = dma.hbm_to_vmem [thread:$0]  (!%p3252_p4), %s3192_s8, 16, %s433_s1, [#allocation20]  }
  0x91   : > { %s2780_s3 = scalar_lea.hbm %s3184_s0, %s2687_s25  ;;  %s459_s20 = scalar_lea.vmem [#allocation10], %s2691_s14 }
  0x92   : > { %s466_s24 = sshll.u32 %s459_s20, 4  ;;  %s2789_s26 = scalar_lea.hbm %s3186_s2, %s2687_s25  ;;  %s2783_s24 = int_to_ptr.vmem [resolvable:$true] %s466_s24 }
  0x93   : > { %s3255_s22 = sand.u32 1, %s2479_s15   ;;  %s2313_s11 = scalar_lea.hbm %s2780_s3, 128 }
  0x94   : > { %s456_s1 = scalar_lea.sflag [#allocation11], %s3255_s22  ;;  %p2314_p0 = scmp.ne.s32.totalorder %s2780_s3, %s2313_s11 }
  0x95   : > { %p3256_p8 = scmp.ne.s32.totalorder %s3250_s18, 0  ;;  %s2318_s10 = scalar_lea.hbm %s3184_s0, 256 }
  0x96   : > { %p2319_p9 = scmp.lt.u32.totalorder %s2780_s3, %s3184_s0  ;;  %p2320_p13 = scmp.lt.u32.totalorder %s2318_s10, %s2313_s11 }
  0x97   : > { %p2316_p4 = pnand %p2314_p0, %p3256_p8  ;;  %p2322_p2 = scmp.lt.u32.totalorder %s2313_s11, %s2780_s3 }
  0x98   : > { %p2321_p7 = por %p2320_p13, %p2319_p9 }
  0x99   : > { %p2317_p11 = pneg %p2316_p4 }
  0x9a   : > { %p2323_p3 = por %p2322_p2, %p2321_p7 }
  0x9c   : > { %p2324_p5 = pnand %p2323_p3, %p2317_p11 }
  0x9e   : > { %2327 = shalt.err (!%p2324_p5)
}
  0x9f   : > { %s2328_s25 = scalar_lea.vmem %s2783_s24, 128  ;;  %s2491_s9 = smov [#allocation10]  }
  0xa0   : > { %p2329_p12 = scmp.ne.s32.totalorder %s2783_s24, %s2328_s25  ;;  %s2333_s20 = sshll.u32 %s2491_s9, 4  ;;  %s2334_s20 = int_to_ptr.vmem [resolvable:$false] %s2333_s20 }
  0xa1   : > { %s2335_s27 = scalar_lea.vmem %s2334_s20, 256  ;;  %p2336_p10 = scmp.lt.s32.totalorder %s2783_s24, %s2334_s20 }
  0xa2   : > { %p2331_p1 = pnand %p2329_p12, %p3256_p8  ;;  %p2337_p0 = scmp.lt.s32.totalorder %s2335_s27, %s2328_s25 }
  0xa4   : > { %p2332_p6 = pneg %p2331_p1  ;;  %p2338_p4 = por %p2337_p0, %p2336_p10 }
  0xa6   : > { %p2339_p9 = pnand %p2338_p4, %p2332_p6 }
  0xa8   : > { %2342 = shalt.err (!%p2339_p9)
}
  0xa9   : > { %p3257_p11 = scmp.ne.s32.totalorder %s3248_s23, 0  ;;  %s495_s12 = scalar_lea.vmem [#allocation15], %s2691_s14 }
  0xaa   : > { %s502_s22 = sshll.u32 %s495_s12, 4  ;;  %s2343_s11 = scalar_lea.hbm %s2789_s26, 128  ;;  %s503_s22 = int_to_ptr.vmem [resolvable:$true] %s502_s22 }
  0xab   : > { %2105 = dma.hbm_to_vmem [thread:$0]  (!%p3257_p11), %s2780_s3, 128, %s2783_s24, %s456_s1  }
  0xac   : > { %p2344_p13 = scmp.ne.s32.totalorder %s2789_s26, %s2343_s11  ;;  %s2348_s10 = scalar_lea.hbm %s3186_s2, 256 }
  0xad   : > { %p2349_p3 = scmp.lt.u32.totalorder %s2789_s26, %s3186_s2  ;;  %p2350_p5 = scmp.lt.u32.totalorder %s2348_s10, %s2343_s11 }
  0xae   : > { %p2346_p7 = pnand %p2344_p13, %p3256_p8  ;;  %p2352_p1 = scmp.lt.u32.totalorder %s2343_s11, %s2789_s26 }
  0xaf   : > { %p2351_p12 = por %p2350_p5, %p2349_p3 }
  0xb0   : > { %p2347_p2 = pneg %p2346_p7 }
  0xb1   : > { %p2353_p6 = por %p2352_p1, %p2351_p12 }
  0xb3   : > { %p2354_p10 = pnand %p2353_p6, %p2347_p2 }
  0xb5   : > { %2357 = shalt.err (!%p2354_p10)
}
  0xb6   : > { %s2358_s14 = scalar_lea.vmem %s503_s22, 128  ;;  %s2492_s3 = smov [#allocation15]  }
  0xb7   : > { %p2359_p0 = scmp.ne.s32.totalorder %s503_s22, %s2358_s14  ;;  %s2363_s24 = sshll.u32 %s2492_s3, 4  ;;  %s2364_s24 = int_to_ptr.vmem [resolvable:$false] %s2363_s24 }
  0xb8   : > { %s2365_s1 = scalar_lea.vmem %s2364_s24, 256  ;;  %p2366_p13 = scmp.lt.s32.totalorder %s503_s22, %s2364_s24 }
  0xb9   : > { %p2361_p4 = pnand %p2359_p0, %p3256_p8  ;;  %p2367_p7 = scmp.lt.s32.totalorder %s2365_s1, %s2358_s14 }
  0xbb   : > { %p2362_p9 = pneg %p2361_p4  ;;  %p2368_p11 = por %p2367_p7, %p2366_p13 }
  0xbd   : > { %p2369_p3 = pnand %p2368_p11, %p2362_p9 }
  0xbf   : > { %2372 = shalt.err (!%p2369_p3)
}
  0xc0   : > { %p3258_p5 = scmp.ne.s32.totalorder %s3248_s23, 0  ;;  %p3259_p2 = scmp.ne.s32.totalorder %s3239_s21, 0 }
  0xc1   : > { %s2836_s18 = sand.u32 (!%p3259_p2), 1, %s2475_s30   ;;  %p3260_p8 = scmp.ne.s32.totalorder (!%p3259_p2), %s3236_s19, 0 }
  0xc2   : > { %2111 = dma.hbm_to_vmem [thread:$0]  (!%p3258_p5), %s2789_s26, 128, %s503_s22, %s2707_s29  }
  0xc3   : > { %511 = sbr.rel (%p3259_p2) target bundleno = 1951 (0x79f), region = 72  ;;  %s2839_s25 = sshll.u32 (!%p3259_p2), %s2836_s18, 3 }
  0xc4   : > { %s514_s9 = scalar_lea.sflag (!%p3259_p2), [#allocation11], %s2836_s18  ;;  %s517_s20 = scalar_lea.vmem (!%p3259_p2), [#allocation10], %s2839_s25 }
  0xca   : > { %2446 = dma.done.wait (%p3260_p8), %s514_s9, 128  }
  0xcb   : > { %2448 = vsyncadd (%p3260_p8), %s514_s9, 4294967168  ;;  %s522_s21 = sand.u32 1, %s2600_s17   ;;  %s526_s23 = scalar_lea.vmem [#allocation13], %s2839_s25 }
  0xcc   : > { %s523_s29 = scalar_lea.sflag [#allocation14], %s522_s21 }
  0xcd   : > { %2450 = dma.done.wait (%p3260_p8), %s523_s29, 256  }
  0xce   : > { %2452 = vsyncadd (%p3260_p8), %s523_s29, 4294967040  ;;  %s535_s26 = scalar_lea.vmem [#allocation15], %s2839_s25  ;;  %p3261_p11 = scmp.eq.s32.totalorder %s2600_s17, 0 }
  0xd0   : > { %2454 = dma.done.wait (%p3261_p11), [#allocation17], 512   ;;  %p3262_p12 = pmov %p3261_p11 }
  0xd1   : > { %p3263_p1 = pmov %p3261_p11 }
  0xd2   : > { %2456 = vsyncadd (%p3262_p12), [#allocation17], 4294966784 }
  0xd3   : > { %2458 = dma.done.wait (%p3263_p1), [#allocation20], 16   ;;  %p3264_p6 = pmov %p3263_p1 }
  0xd4   : > { %v2493_v0 = vmov 0.0   ;;  %vm2494_vm0 = vmmov 0   ;;  %v2173_v1 = vld [vmem:[#allocation18] sm:$0xff]   ;;  %v2174_v2 = vld [vmem:[#allocation16] sm:$0xff]   ;;  %v2175_v3 = vld [vmem:[#allocation18 + $0x8] sm:$0xff]   ;;  %vm634_vm1 = vcmask 261120  }
  0xd5   : > { %2460 = vsyncadd (%p3264_p6), [#allocation20], 4294967280  ;;  %1998 = vmatprep.subr.bf16.mxu1 %v2493_v0  ;;  %1990 = vmatprep.subr.bf16.mxu0 %v2493_v0  ;;  %v679_v4 = vld [vmem:[%s526_s23] sm:$0xff]  ;;  %v2870_v6 = vld [vmem:[%s517_s20] sm:$0xff]  ;;  %vm818_vm2 = vcmask 58368   ;;  %s2495_s11 = smov 104  }
  0xd6   : > { %2002 = vmatprep.mubr.msk.bf16.mxu1 %vm2494_vm0, %v2493_v0  ;;  %1994 = vmatprep.mubr.msk.bf16.mxu0 %vm2494_vm0, %v2493_v0  ;;  %v2176_v5 = vld [vmem:[#allocation16 + $0x8] sm:$0xff]   ;;  %v680_v7 = vpack.c.bf16 %v679_v4, %v679_v4  ;;  %v610_v8 = vpack.c.bf16 %v2870_v6, %v2870_v6  ;;  %v1929_v9 = vld [vmem:[%s3191_s7] ss:$0 sm:$0xff]  ;;  %s2496_s5 = smov 120   ;;  %s2497_s16 = smov 112   ;;  %vm882_vm3 = vcmask 64512  }
  0xd7   : > { %1999 = vmatpush3.bf16.msra.mxu1 %v2173_v1  ;;  %1991 = vmatpush3.bf16.msra.mxu0 %v2174_v2  ;;  %v1925_v10 = vld [vmem:[%s3190_s6] ss:$0 sm:$0xff]  ;;  %s3265_s13 = sld [smem:[#allocation38_spill]]  ;;  %vm946_vm4 = vcmask 1043456   ;;  %s1924_s24 = sshll.u32 %s2836_s18, 5  ;;  %vm998_vm5 = vcmask 123968  }
  0xd8   : > { %2000 = vmatprep.subr.bf16.mxu1 %v2493_v0  ;;  %1992 = vmatprep.subr.bf16.mxu0 %v2493_v0  ;;  %v748_v43 = vld [vmem:[%s535_s26] sm:$0xff]  ;;  %s3016_s1 = scalar_lea.vmem [#allocation22], %s1924_s24  ;;  %s2498_s9 = smov 8   ;;  %vm1005_vm6 = vcmask 189568   ;;  %vm1012_vm7 = vcmask 255168  }
  0xd9   : > { %v749_v46 = vpack.c.bf16 %v748_v43, %v748_v43  ;;  %s2499_s20 = smov 16   ;;  %s2500_s21 = smov 24  }
  0xda   : > { %s3266_s26 = sld [smem:[#allocation39_spill]]  ;;  %s1727_s10 = sshll.u32 %s3016_s1, 4  ;;  %s3101_s10 = int_to_ptr.vmem [resolvable:$true] %s1727_s10 }
  0xdb   : > { %2001 = vmatpush3.bf16.msra.mxu1 %v2175_v3  ;;  %1993 = vmatpush3.bf16.msra.mxu0 %v2176_v5  ;;  %s3269_s3 = sld [smem:[#allocation44_spill]]  ;;  %s2501_s29 = smov [#allocation22]  }
  0xdc   : > { %2014 = vmatprep.subr.bf16.mxu1 %v2493_v0  ;;  %2006 = vmatprep.subr.bf16.mxu0 %v2493_v0  ;;  %s2377_s23 = sshll.u32 %s2501_s29, 4  ;;  %s2378_s23 = int_to_ptr.vmem [resolvable:$false] %s2377_s23 }
  0xdd   : > { %v2177_v41 = vld [vmem:[%s3265_s13] sm:$0xff]   ;;  %v2178_v42 = vld [vmem:[%s3265_s13 + $0x8] sm:$0xff]   ;;  %p2380_p13 = scmp.lt.s32.totalorder %s3101_s10, %s2378_s23 }
  0xde   : > { %2003 = vmatmul.mubr.msk.bf16.vlgmr.msra.gmra.mrb[0].mxu1 %vm634_vm1, %v680_v7  ;;  %1995 = vmatmul.mubr.msk.bf16.vlgmr.msra.gmra.mrb[0].mxu0 %vm634_vm1, %v610_v8 }
  0xdf   : > { %2016 = vmatprep.mubr.msk.bf16.mxu1 %vm2494_vm0, %v2493_v0  ;;  %2010 = vmatprep.mubr.msk.bf16.mxu0 %vm2494_vm0, %v2493_v0 }
  0xe0   : > { %2007 = vmatpush3.bf16.msra.mxu0 %v2177_v41 }
  0xe1   : > { %2008 = vmatprep.subr.bf16.mxu0 %v2493_v0 }
  0xe4   : > { %2009 = vmatpush3.bf16.msra.mxu0 %v2178_v42 }
  0xe5   : > { %2020 = vmatprep.subr.bf16.mxu0 %v2493_v0 }
  0xe7   : > { %2011 = vmatmul.mubr.msk.bf16.vlgmr.msra.gmra.mrb[4].mxu0 %vm634_vm1, %v749_v46 }
  0xe8   : > { %2022 = vmatprep.mubr.msk.bf16.mxu0 %vm2494_vm0, %v2493_v0 }
 0x1b1   : > { %v741_v11 = vpop.f32.mrb[0].mxu1  ;;  %v672_v14 = vpop.f32.mrb[0].mxu0 }
 0x1b2   : > { %v742_v12 = vadd.f32 %v1929_v9, %v741_v11  ;;  %v2004_v13 = vpop.f32.mrb[1].mxu1  ;;  %v673_v16 = vadd.f32 %v1925_v10, %v672_v14  ;;  %v1996_v17 = vpop.f32.mrb[1].mxu0 }
 0x1b3   : > { %v744_v15 = vpop.f32.mrb[2].mxu1  ;;  %v675_v19 = vpop.f32.mrb[2].mxu0 }
 0x1b4   : > { %747 = vst.msk [vmem:[#allocation3] sm:$0xff] %vm634_vm1, %v742_v12  ;;  %v2005_v18 = vpop.f32.mrb[3].mxu1  ;;  %678 = vst.msk [vmem:[#allocation2] sm:$0xff] %vm634_vm1, %v673_v16  ;;  %v1997_v20 = vpop.f32.mrb[3].mxu0 }
 0x1bb   : > { %v820_v21 = vld [vmem:[#allocation3] sm:$0x3]  ;;  %v817_v22 = vld [vmem:[#allocation2] sm:$0x3]  ;;  %v1045_v29 = vld [vmem:[#allocation3 + $0x2] sm:$0x3] }
 0x1bc   : > { %821 = vst.msk [vmem:[#allocation6] sm:$0x3] %vm818_vm2, %v820_v21  ;;  %819 = vst.msk [vmem:[#allocation5] sm:$0x3] %vm818_vm2, %v817_v22  ;;  %v866_v23 = vld [vmem:[#allocation3] sm:$0x3] }
 0x1bd   : > { %868 = vrot.lane.b32.xlu1 %v866_v23, %s2495_s11  ;;  %v830_v24 = vld [vmem:[#allocation3] sm:$0x3]  ;;  %v824_v25 = vld [vmem:[#allocation2] sm:$0x3]  ;;  %v1027_v30 = vld [vmem:[#allocation3 + $0x2] sm:$0x3] }
 0x1be   : > { %832 = vrot.lane.b32.xlu0 %v830_v24, %s2496_s5  ;;  %v848_v26 = vld [vmem:[#allocation3] sm:$0x3]  ;;  %v860_v27 = vld [vmem:[#allocation2] sm:$0x3]  ;;  %v1021_v31 = vld [vmem:[#allocation2 + $0x2] sm:$0x3] }
 0x1bf   : > { %v842_v28 = vld [vmem:[#allocation2] sm:$0x3]  ;;  %v1063_v32 = vld [vmem:[#allocation3 + $0x2] sm:$0x3]  ;;  %v1057_v33 = vld [vmem:[#allocation2 + $0x2] sm:$0x3] }
 0x1c0   : > { %v1039_v34 = vld [vmem:[#allocation2 + $0x2] sm:$0x3]  ;;  %v1238_v35 = vld [vmem:[#allocation3 + $0x4] sm:$0x3]  ;;  %v1214_v37 = vld [vmem:[#allocation2 + $0x4] sm:$0x3] }
 0x1c1   : > { %826 = vrot.lane.b32.xlu1 %v824_v25, %s2496_s5  ;;  %v1220_v36 = vld [vmem:[#allocation3 + $0x4] sm:$0x3]  ;;  %v1250_v39 = vld [vmem:[#allocation2 + $0x4] sm:$0x3]  ;;  %v1431_v44 = vld [vmem:[#allocation3 + $0x6] sm:$0x3] }
 0x1c2   : > { %850 = vrot.lane.b32.xlu0 %v848_v26, %s2497_s16  ;;  %v1256_v38 = vld [vmem:[#allocation3 + $0x4] sm:$0x3]  ;;  %v1232_v40 = vld [vmem:[#allocation2 + $0x4] sm:$0x3]  ;;  %v1413_v45 = vld [vmem:[#allocation3 + $0x6] sm:$0x3] }
 0x1c3   : > { %v1407_v47 = vld [vmem:[#allocation2 + $0x6] sm:$0x3]  ;;  %v1449_v48 = vld [vmem:[#allocation3 + $0x6] sm:$0x3]  ;;  %v1017_v58 = vld [vmem:[#allocation3 + $0x2] sm:$0x3] }
 0x1c4   : > { %v1443_v49 = vld [vmem:[#allocation2 + $0x6] sm:$0x3]  ;;  %v1015_v1 = vld [vmem:[#allocation2 + $0x2] sm:$0x3]  ;;  %v1210_v9 = vld [vmem:[#allocation3 + $0x4] sm:$0x3] }
 0x1c5   : > { %862 = vrot.lane.b32.xlu1 %v860_v27, %s2495_s11  ;;  %v1425_v50 = vld [vmem:[#allocation2 + $0x6] sm:$0x3]  ;;  %v1208_v15 = vld [vmem:[#allocation2 + $0x4] sm:$0x3]  ;;  %v1403_v22 = vld [vmem:[#allocation3 + $0x6] sm:$0x3] }
 0x1c6   : > { %844 = vrot.lane.b32.xlu0 %v842_v28, %s2497_s16  ;;  %v1401_v28 = vld [vmem:[#allocation2 + $0x6] sm:$0x3] }
 0x1c9   : > { %1047 = vrot.lane.b32.xlu1 %v1045_v29, %s2497_s16 }
 0x1ca   : > { %1029 = vrot.lane.b32.xlu0 %v1027_v30, %s2496_s5 }
 0x1cd   : > { %1023 = vrot.lane.b32.xlu1 %v1021_v31, %s2496_s5 }
 0x1ce   : > { %1065 = vrot.lane.b32.xlu0 %v1063_v32, %s2495_s11 }
 0x1d1   : > { %1059 = vrot.lane.b32.xlu1 %v1057_v33, %s2495_s11 }
 0x1d2   : > { %1041 = vrot.lane.b32.xlu0 %v1039_v34, %s2497_s16 }
 0x1d5   : > { %1240 = vrot.lane.b32.xlu1 %v1238_v35, %s2497_s16 }
 0x1d6   : > { %1222 = vrot.lane.b32.xlu0 %v1220_v36, %s2496_s5 }
 0x1d9   : > { %1216 = vrot.lane.b32.xlu1 %v1214_v37, %s2496_s5 }
 0x1da   : > { %1258 = vrot.lane.b32.xlu0 %v1256_v38, %s2495_s11 }
 0x1dd   : > { %1252 = vrot.lane.b32.xlu1 %v1250_v39, %s2495_s11  ;;  %v1933_v39 = vld [vmem:[#allocation19] ss:$0 sm:$0xff] }
 0x1de   : > { %1234 = vrot.lane.b32.xlu0 %v1232_v40, %s2497_s16  ;;  %v810_v40 = vpop.f32.mrb[4].mxu0 }
 0x1df   : > { %v811_v41 = vadd.f32 %v1933_v39, %v810_v40  ;;  %v2012_v42 = vpop.f32.mrb[5].mxu0 }
 0x1e0   : > { %v813_v43 = vpop.f32.mrb[6].mxu0 }
 0x1e1   : > { %1433 = vrot.lane.b32.xlu1 %v1431_v44, %s2497_s16  ;;  %816 = vst.msk [vmem:[#allocation4] sm:$0xff] %vm634_vm1, %v811_v41  ;;  %v2013_v44 = vpop.f32.mrb[7].mxu0 }
 0x1e2   : > { %1415 = vrot.lane.b32.xlu0 %v1413_v45, %s2496_s5 }
 0x1e5   : > { %1409 = vrot.lane.b32.xlu1 %v1407_v47, %s2496_s5 }
 0x1e6   : > { %1451 = vrot.lane.b32.xlu0 %v1449_v48, %s2495_s11 }
 0x1e8   : > { %v822_v45 = vld [vmem:[#allocation4] sm:$0x3] }
 0x1e9   : > { %1445 = vrot.lane.b32.xlu1 %v1443_v49, %s2495_s11  ;;  %823 = vst.msk [vmem:[#allocation7] sm:$0x3] %vm818_vm2, %v822_v45  ;;  %v1212_v45 = vld [vmem:[#allocation4 + $0x4] sm:$0x3] }
 0x1ea   : > { %1427 = vrot.lane.b32.xlu0 %v1425_v50, %s2497_s16 }
 0x22f   : > { %v869_v51 = vpop.permute.xlu1 %868 }
 0x230   : > { %871 = vst.msk [vmem:[#allocation6 + $0x6] sm:$0x3] %vm818_vm2, %v869_v51  ;;  %v833_v52 = vpop.permute.xlu0 %832 }
 0x231   : > { %835 = vst.msk [vmem:[#allocation6 + $0x2] sm:$0x3] %vm818_vm2, %v833_v52 }
 0x233   : > { %v827_v53 = vpop.permute.xlu1 %826 }
 0x234   : > { %v851_v54 = vpop.permute.xlu0 %850  ;;  %829 = vst.msk [vmem:[#allocation5 + $0x2] sm:$0x3] %vm818_vm2, %v827_v53 }
 0x235   : > { %853 = vst.msk [vmem:[#allocation6 + $0x4] sm:$0x3] %vm818_vm2, %v851_v54 }
 0x237   : > { %v863_v55 = vpop.permute.xlu1 %862 }
 0x238   : > { %v845_v56 = vpop.permute.xlu0 %844  ;;  %865 = vst.msk [vmem:[#allocation5 + $0x6] sm:$0x3] %vm818_vm2, %v863_v55 }
 0x239   : > { %847 = vst.msk [vmem:[#allocation5 + $0x4] sm:$0x3] %vm818_vm2, %v845_v56 }
 0x23b   : > { %v1048_v57 = vpop.permute.xlu1 %1047 }
 0x23c   : > { %v880_v59 = vld [vmem:[#allocation6] sm:$0xff]  ;;  %v1030_v60 = vpop.permute.xlu0 %1029 }
 0x23d   : > { %1018 = vst.msk [vmem:[#allocation6] sm:$0x3] %vm818_vm2, %v1017_v58  ;;  %1032 = vst.msk [vmem:[#allocation6 + $0x2] sm:$0x3] %vm818_vm2, %v1030_v60  ;;  %v881_v61 = vpack.c.bf16 %v880_v59, %v880_v59 }
 0x23e   : > { %1050 = vst.msk [vmem:[#allocation6 + $0x4] sm:$0x3] %vm818_vm2, %v1048_v57 }
 0x23f   : > { %v887_v62 = vsel %vm882_vm3, %v881_v61, 0  ;;  %v1024_v63 = vpop.permute.xlu1 %1023  ;;  %v836_v61 = vld [vmem:[#allocation4] sm:$0x3] }
 0x240   : > { %v878_v2 = vld [vmem:[#allocation5] sm:$0xff]  ;;  %2015 = vmatpush3.bf16.xpose.msra.mxu1 %v887_v62  ;;  %v1066_v3 = vpop.permute.xlu0 %1065  ;;  %v872_v62 = vld [vmem:[#allocation4] sm:$0x3] }
 0x241   : > { %1016 = vst.msk [vmem:[#allocation5] sm:$0x3] %vm818_vm2, %v1015_v1  ;;  %1068 = vst.msk [vmem:[#allocation6 + $0x6] sm:$0x3] %vm818_vm2, %v1066_v3  ;;  %2026 = vmatprep.subr.bf16.mxu1 %v2493_v0  ;;  %v879_v7 = vpack.c.bf16 %v878_v2, %v878_v2  ;;  %v1226_v1 = vld [vmem:[#allocation4 + $0x4] sm:$0x3] }
 0x242   : > { %1026 = vst.msk [vmem:[#allocation5 + $0x2] sm:$0x3] %vm818_vm2, %v1024_v63 }
 0x243   : > { %v1060_v4 = vpop.permute.xlu1 %1059 }
 0x244   : > { %v1042_v5 = vpop.permute.xlu0 %1041  ;;  %1062 = vst.msk [vmem:[#allocation5 + $0x6] sm:$0x3] %vm818_vm2, %v1060_v4 }
 0x245   : > { %1044 = vst.msk [vmem:[#allocation5 + $0x4] sm:$0x3] %vm818_vm2, %v1042_v5  ;;  %v854_v5 = vld [vmem:[#allocation4] sm:$0x3] }
 0x247   : > { %2017 = vmatmul.mubr.msk.bf16.vlgmr.msra.gmra.mrb[4].mxu1 %vm882_vm3, %v879_v7  ;;  %v1241_v8 = vpop.permute.xlu1 %1240 }
 0x248   : > { %v1223_v10 = vpop.permute.xlu0 %1222  ;;  %v1077_v11 = vld [vmem:[#allocation6] sm:$0xff]  ;;  %2028 = vmatprep.mubr.msk.bf16.mxu1 %vm2494_vm0, %v2493_v0 }
 0x249   : > { %1225 = vst.msk [vmem:[#allocation6 + $0x2] sm:$0x3] %vm818_vm2, %v1223_v10  ;;  %1211 = vst.msk [vmem:[#allocation6] sm:$0x3] %vm818_vm2, %v1210_v9  ;;  %v1078_v12 = vpack.c.bf16 %v1077_v11, %v1077_v11  ;;  %v1051_v9 = vld [vmem:[#allocation4 + $0x2] sm:$0x3] }
 0x24a   : > { %1243 = vst.msk [vmem:[#allocation6 + $0x4] sm:$0x3] %vm818_vm2, %v1241_v8  ;;  %v1033_v8 = vld [vmem:[#allocation4 + $0x2] sm:$0x3] }
 0x24b   : > { %v1217_v13 = vpop.permute.xlu1 %1216  ;;  %v1083_v14 = vsel %vm882_vm3, %v1078_v12, 0  ;;  %v1069_v10 = vld [vmem:[#allocation4 + $0x2] sm:$0x3] }
 0x24c   : > { %v1259_v16 = vpop.permute.xlu0 %1258  ;;  %v1075_v17 = vld [vmem:[#allocation5] sm:$0xff]  ;;  %2027 = vmatpush3.bf16.xpose.msra.mxu1 %v1083_v14 }
 0x24d   : > { %1261 = vst.msk [vmem:[#allocation6 + $0x6] sm:$0x3] %vm818_vm2, %v1259_v16  ;;  %1219 = vst.msk [vmem:[#allocation5 + $0x2] sm:$0x3] %vm818_vm2, %v1217_v13  ;;  %2038 = vmatprep.subr.bf16.mxu1 %v2493_v0  ;;  %v1076_v20 = vpack.c.bf16 %v1075_v17, %v1075_v17 }
 0x24e   : > { %1209 = vst.msk [vmem:[#allocation5] sm:$0x3] %vm818_vm2, %v1208_v15 }
 0x24f   : > { %v1253_v18 = vpop.permute.xlu1 %1252 }
 0x250   : > { %v1235_v19 = vpop.permute.xlu0 %1234  ;;  %1255 = vst.msk [vmem:[#allocation5 + $0x6] sm:$0x3] %vm818_vm2, %v1253_v18 }
 0x251   : > { %1237 = vst.msk [vmem:[#allocation5 + $0x4] sm:$0x3] %vm818_vm2, %v1235_v19 }
 0x253   : > { %2029 = vmatmul.mubr.msk.bf16.vlgmr.msra.gmra.mrb[8].mxu1 %vm882_vm3, %v1076_v20  ;;  %v1434_v21 = vpop.permute.xlu1 %1433 }
 0x254   : > { %v1416_v23 = vpop.permute.xlu0 %1415  ;;  %v1270_v24 = vld [vmem:[#allocation6] sm:$0xff]  ;;  %2040 = vmatprep.mubr.msk.bf16.mxu1 %vm2494_vm0, %v2493_v0 }
 0x255   : > { %1404 = vst.msk [vmem:[#allocation6] sm:$0x3] %vm818_vm2, %v1403_v22  ;;  %1418 = vst.msk [vmem:[#allocation6 + $0x2] sm:$0x3] %vm818_vm2, %v1416_v23  ;;  %v1271_v25 = vpack.c.bf16 %v1270_v24, %v1270_v24 }
 0x256   : > { %1436 = vst.msk [vmem:[#allocation6 + $0x4] sm:$0x3] %vm818_vm2, %v1434_v21 }
 0x257   : > { %v1410_v26 = vpop.permute.xlu1 %1409  ;;  %v1276_v27 = vsel %vm882_vm3, %v1271_v25, 0 }
 0x258   : > { %v1452_v29 = vpop.permute.xlu0 %1451  ;;  %v1268_v30 = vld [vmem:[#allocation5] sm:$0xff]  ;;  %2039 = vmatpush3.bf16.xpose.msra.mxu1 %v1276_v27  ;;  %v1019_v27 = vld [vmem:[#allocation4 + $0x2] sm:$0x3] }
 0x259   : > { %1454 = vst.msk [vmem:[#allocation6 + $0x6] sm:$0x3] %vm818_vm2, %v1452_v29  ;;  %1402 = vst.msk [vmem:[#allocation5] sm:$0x3] %vm818_vm2, %v1401_v28  ;;  %2050 = vmatprep.subr.bf16.mxu1 %v2493_v0  ;;  %v1269_v33 = vpack.c.bf16 %v1268_v30, %v1268_v30 }
 0x25a   : > { %1412 = vst.msk [vmem:[#allocation5 + $0x2] sm:$0x3] %vm818_vm2, %v1410_v26 }
 0x25b   : > { %v1446_v31 = vpop.permute.xlu1 %1445 }
 0x25c   : > { %v1428_v32 = vpop.permute.xlu0 %1427  ;;  %1448 = vst.msk [vmem:[#allocation5 + $0x6] sm:$0x3] %vm818_vm2, %v1446_v31 }
 0x25d   : > { %1430 = vst.msk [vmem:[#allocation5 + $0x4] sm:$0x3] %vm818_vm2, %v1428_v32 }
 0x25f   : > { %2041 = vmatmul.mubr.msk.bf16.vlgmr.msra.gmra.mrb[12].mxu1 %vm882_vm3, %v1269_v33  ;;  %v1262_v33 = vld [vmem:[#allocation4 + $0x4] sm:$0x3] }
 0x260   : > { %v1463_v34 = vld [vmem:[#allocation6] sm:$0xff]  ;;  %2052 = vmatprep.mubr.msk.bf16.mxu1 %vm2494_vm0, %v2493_v0 }
 0x261   : > { %v1464_v35 = vpack.c.bf16 %v1463_v34, %v1463_v34  ;;  %v1419_v34 = vld [vmem:[#allocation4 + $0x6] sm:$0x3] }
 0x263   : > { %v1469_v36 = vsel %vm882_vm3, %v1464_v35, 0  ;;  %v1437_v35 = vld [vmem:[#allocation4 + $0x6] sm:$0x3] }
 0x264   : > { %2051 = vmatpush3.bf16.xpose.msra.mxu1 %v1469_v36  ;;  %v1461_v37 = vld [vmem:[#allocation5] sm:$0xff]  ;;  %v1455_v36 = vld [vmem:[#allocation4 + $0x6] sm:$0x3] }
 0x265   : > { %2062 = vmatprep.subr.bf16.mxu1 %v2493_v0  ;;  %v1462_v38 = vpack.c.bf16 %v1461_v37, %v1461_v37 }
 0x26b   : > { %2053 = vmatmul.mubr.msk.bf16.vlgmr.msra.gmra.mrb[16].mxu1 %vm882_vm3, %v1462_v38 }
 0x26c   : > { %2066 = vmatprep.mubr.msk.bf16.mxu1 %vm2494_vm0, %v2493_v0 }
 0x31a   : > { %v923_v46 = vpop.f32.mrb[4].mxu1 }
 0x31b   : > { %v2018_v47 = vpop.f32.mrb[5].mxu1  ;;  %v929_v48 = vsel %vm882_vm3, %v923_v46, -inf }
 0x31c   : > { %930 = vmax.xlane.f32.xlu0 %v929_v48  ;;  %v926_v49 = vpop.f32.mrb[6].mxu1  ;;  %v1244_v48 = vld [vmem:[#allocation4 + $0x4] sm:$0x3] }
 0x31d   : > { %v2019_v50 = vpop.f32.mrb[7].mxu1 }
 0x326   : > { %v1119_v51 = vpop.f32.mrb[8].mxu1 }
 0x327   : > { %v2030_v52 = vpop.f32.mrb[9].mxu1  ;;  %v1125_v53 = vsel %vm882_vm3, %v1119_v51, -inf }
 0x328   : > { %1126 = vmax.xlane.f32.xlu1 %v1125_v53  ;;  %v1122_v54 = vpop.f32.mrb[10].mxu1 }
 0x329   : > { %v2031_v55 = vpop.f32.mrb[11].mxu1 }
 0x332   : > { %v1312_v56 = vpop.f32.mrb[12].mxu1 }
 0x333   : > { %v2042_v57 = vpop.f32.mrb[13].mxu1  ;;  %v1318_v58 = vsel %vm882_vm3, %v1312_v56, -inf }
 0x334   : > { %1319 = vmax.xlane.f32.xlu0 %v1318_v58  ;;  %v1315_v59 = vpop.f32.mrb[14].mxu1 }
 0x335   : > { %v2043_v60 = vpop.f32.mrb[15].mxu1 }
 0x339   : > { %838 = vrot.lane.b32.xlu1 %v836_v61, %s2496_s5 }
 0x33d   : > { %874 = vrot.lane.b32.xlu1 %v872_v62, %s2495_s11 }
 0x33e   : > { %v1505_v63 = vpop.f32.mrb[16].mxu1 }
 0x33f   : > { %v2054_v2 = vpop.f32.mrb[17].mxu1  ;;  %v1511_v7 = vsel %vm882_vm3, %v1505_v63, -inf }
 0x340   : > { %v1508_v3 = vpop.f32.mrb[18].mxu1 }
 0x341   : > { %v2055_v4 = vpop.f32.mrb[19].mxu1  ;;  %1228 = vrot.lane.b32.xlu1 %v1226_v1, %s2496_s5 }
 0x34a   : > { %856 = vrot.lane.b32.xlu0 %v854_v5, %s2497_s16 }
 0x369   : > { %1512 = vmax.xlane.f32.xlu0 %v1511_v7 }
 0x37f   : > { %1035 = vrot.lane.b32.xlu0 %v1033_v8, %s2496_s5 }
 0x383   : > { %1053 = vrot.lane.b32.xlu0 %v1051_v9, %s2497_s16  ;;  %v1405_v9 = vld [vmem:[#allocation4 + $0x6] sm:$0x3] }
 0x387   : > { %1071 = vrot.lane.b32.xlu0 %v1069_v10, %s2495_s11 }
 0x3a9   : > { %v931_v11 = vpop.xlane.xlu0 %930 }
 0x3aa   : > { %v932_v12 = vsub.f32 %v923_v46, %v931_v11 }
 0x3ac   : > { %v933_v13 = vmul.f32 1.442695, %v932_v12 }
 0x3ae   : > { %2181 = vpow2.f32 %v933_v13 }
 0x3b5   : > { %v1127_v14 = vpop.xlane.xlu1 %1126 }
 0x3b6   : > { %v1128_v15 = vsub.f32 %v1119_v51, %v1127_v14 }
 0x3b8   : > { %v2182_v16 = vpop.eup %2181  ;;  %v1129_v17 = vmul.f32 1.442695, %v1128_v15 }
 0x3b9   : > { %v839_v18 = vpop.permute.xlu1 %838  ;;  %v935_v19 = vsel %vm882_vm3, %v2182_v16, 0.0 }
 0x3ba   : > { %2183 = vpow2.f32 %v1129_v17  ;;  %841 = vst.msk [vmem:[#allocation7 + $0x2] sm:$0x3] %vm818_vm2, %v839_v18  ;;  %936 = vadd.xlane.f32.xlu1 %v935_v19 }
 0x3bd   : > { %v875_v20 = vpop.permute.xlu1 %874 }
 0x3be   : > { %877 = vst.msk [vmem:[#allocation7 + $0x6] sm:$0x3] %vm818_vm2, %v875_v20 }
 0x3c1   : > { %v1320_v21 = vpop.xlane.xlu0 %1319  ;;  %v1229_v46 = vpop.permute.xlu1 %1228 }
 0x3c2   : > { %v1321_v22 = vsub.f32 %v1312_v56, %v1320_v21 }
 0x3c4   : > { %v2995_v23 = vpop.eup %2183  ;;  %v1322_v24 = vmul.f32 1.442695, %v1321_v22 }
 0x3c5   : > { %v857_v25 = vpop.permute.xlu0 %856  ;;  %v1131_v26 = vsel %vm882_vm3, %v2995_v23, 0.0 }
 0x3c6   : > { %2185 = vpow2.f32 %v1322_v24  ;;  %859 = vst.msk [vmem:[#allocation7 + $0x4] sm:$0x3] %vm818_vm2, %v857_v25  ;;  %1132 = vadd.xlane.f32.xlu0 %v1131_v26 }
 0x3cd   : > { %v941_v28 = vld [vmem:[#allocation7] sm:$0xff] }
 0x3ce   : > { %1020 = vst.msk [vmem:[#allocation7] sm:$0x3] %vm818_vm2, %v1019_v27  ;;  %v942_v29 = vpack.c.bf16 %v941_v28, %v941_v28 }
 0x3d0   : > { %v2186_v30 = vpop.eup %2185  ;;  %v948_v31 = vsel %vm946_vm4, %v942_v29, 0 }
 0x3d1   : > { %2021 = vmatpush3.bf16.msra.mxu0 %v948_v31  ;;  %v1324_v32 = vsel %vm882_vm3, %v2186_v30, 0.0 }
 0x3d2   : > { %1325 = vadd.xlane.f32.xlu1 %v1324_v32  ;;  %2032 = vmatprep.subr.bf16.mxu0 %v2493_v0 }
 0x3e3   : > { %1264 = vrot.lane.b32.xlu1 %v1262_v33, %s2495_s11 }
 0x3e7   : > { %1421 = vrot.lane.b32.xlu1 %v1419_v34, %s2496_s5  ;;  %s3268_s5 = sld [smem:[#allocation35_spill]] }
 0x3eb   : > { %1439 = vrot.lane.b32.xlu1 %v1437_v35, %s2497_s16 }
 0x3ed   : > { %p3270_p0 = scmp.ne.s32.totalorder %s3268_s5, 0 }
 0x3ef   : > { %1457 = vrot.lane.b32.xlu1 %v1455_v36, %s2495_s11  ;;  %s3267_s11 = sld [smem:[#allocation40_spill]] }
 0x3f6   : > { %v1513_v37 = vpop.xlane.xlu0 %1512 }
 0x3f7   : > { %v1514_v38 = vsub.f32 %v1505_v63, %v1513_v37 }
 0x3f9   : > { %v1515_v39 = vmul.f32 1.442695, %v1514_v38 }
 0x3fa   : > { %v1036_v40 = vpop.permute.xlu0 %1035 }
 0x3fb   : > { %2187 = vpow2.f32 %v1515_v39  ;;  %1038 = vst.msk [vmem:[#allocation7 + $0x2] sm:$0x3] %vm818_vm2, %v1036_v40 }
 0x3fe   : > { %v1054_v41 = vpop.permute.xlu0 %1053 }
 0x3ff   : > { %1056 = vst.msk [vmem:[#allocation7 + $0x4] sm:$0x3] %vm818_vm2, %v1054_v41 }
 0x402   : > { %v1072_v42 = vpop.permute.xlu0 %1071 }
 0x403   : > { %1074 = vst.msk [vmem:[#allocation7 + $0x6] sm:$0x3] %vm818_vm2, %v1072_v42 }
 0x405   : > { %v2188_v43 = vpop.eup %2187 }
 0x406   : > { %v1517_v44 = vsel %vm882_vm3, %v2188_v43, 0.0 }
 0x407   : > { %1518 = vadd.xlane.f32.xlu0 %v1517_v44 }
 0x40a   : > { %v1137_v47 = vld [vmem:[#allocation7] sm:$0xff] }
 0x40b   : > { %1213 = vst.msk [vmem:[#allocation7] sm:$0x3] %vm818_vm2, %v1212_v45  ;;  %1231 = vst.msk [vmem:[#allocation7 + $0x2] sm:$0x3] %vm818_vm2, %v1229_v46  ;;  %v1138_v53 = vpack.c.bf16 %v1137_v47, %v1137_v47  ;;  %v2179_v45 = vld [vmem:[%s3266_s26] sm:$0xff]   ;;  %v2180_v46 = vld [vmem:[%s3266_s26 + $0x8] sm:$0xff]  }
 0x40c   : > { %2063 = vmatpush3.bf16.msra.mxu1 %v2179_v45 }
 0x40d   : > { %v1143_v55 = vsel %vm946_vm4, %v1138_v53, 0  ;;  %2064 = vmatprep.subr.bf16.mxu1 %v2493_v0 }
 0x410   : > { %2065 = vmatpush3.bf16.msra.mxu1 %v2180_v46 }
 0x41d   : > { %1246 = vrot.lane.b32.xlu0 %v1244_v48, %s2497_s16  ;;  %s1961_s16 = sshll.u32 %s2600_s17, 9 }
 0x41e   : > { %s3099_s24 = scalar_lea.hbm %s3269_s3, %s1961_s16 }
 0x447   : > { %v937_v49 = vpop.xlane.xlu1 %936 }
 0x448   : > { %2189 = vrcp.f32 %v937_v49 }
 0x452   : > { %v2190_v50 = vpop.eup %2189 }
 0x453   : > { %v939_v51 = vmul.f32 %v2190_v50, %v2182_v16  ;;  %v1133_v52 = vpop.xlane.xlu0 %1132 }
 0x454   : > { %2191 = vrcp.f32 %v1133_v52 }
 0x455   : > { %1014 = vst.msk [vmem:[%s3016_s1] sm:$0xff] %vm882_vm3, %v939_v51  ;;  %v940_v54 = vpack.c.bf16 %v939_v51, %v939_v51 }
 0x457   : > { %2023 = vmatmul.mubr.msk.bf16.vlgmr.msra.gmra.mrb[8].mxu0 %vm882_vm3, %v940_v54 }
 0x458   : > { %2033 = vmatpush3.bf16.msra.mxu0 %v1143_v55  ;;  %2034 = vmatprep.mubr.msk.bf16.mxu0 %vm2494_vm0, %v2493_v0 }
 0x459   : > { %2044 = vmatprep.subr.bf16.mxu0 %v2493_v0 }
 0x45e   : > { %v2192_v56 = vpop.eup %2191 }
 0x45f   : > { %v1135_v57 = vmul.f32 %v2192_v56, %v2995_v23  ;;  %v1326_v58 = vpop.xlane.xlu1 %1325 }
 0x460   : > { %2193 = vrcp.f32 %v1326_v58 }
 0x461   : > { %1941 = vst.msk [vmem:[%s3016_s1 + $0x8] sm:$0xff] %vm882_vm3, %v1135_v57  ;;  %v1136_v59 = vpack.c.bf16 %v1135_v57, %v1135_v57 }
 0x463   : > { %v1265_v60 = vpop.permute.xlu1 %1264  ;;  %2035 = vmatmul.mubr.msk.bf16.vlgmr.msra.gmra.mrb[12].mxu0 %vm882_vm3, %v1136_v59 }
 0x464   : > { %1267 = vst.msk [vmem:[#allocation7 + $0x6] sm:$0x3] %vm818_vm2, %v1265_v60  ;;  %2046 = vmatprep.mubr.msk.bf16.mxu0 %vm2494_vm0, %v2493_v0 }
 0x467   : > { %v1422_v63 = vpop.permute.xlu1 %1421 }
 0x46a   : > { %v2194_v61 = vpop.eup %2193 }
 0x46b   : > { %v1328_v62 = vmul.f32 %v2194_v61, %v2186_v30  ;;  %v1440_v3 = vpop.permute.xlu1 %1439 }
 0x46d   : > { %1944 = vst.msk [vmem:[%s3016_s1 + $0x10] sm:$0xff] %vm882_vm3, %v1328_v62  ;;  %v1329_v12 = vpack.c.bf16 %v1328_v62, %v1328_v62 }
 0x46f   : > { %v1458_v5 = vpop.permute.xlu1 %1457 }
 0x494   : > { %v1519_v1 = vpop.xlane.xlu0 %1518 }
 0x495   : > { %2195 = vrcp.f32 %v1519_v1  ;;  %v1948_v1 = vld [vmem:[%s3267_s11] ss:$0 sm:$0xff] }
 0x498   : > { %v1247_v2 = vpop.permute.xlu0 %1246 }
 0x499   : > { %1249 = vst.msk [vmem:[#allocation7 + $0x4] sm:$0x3] %vm818_vm2, %v1247_v2 }
 0x49f   : > { %v2196_v4 = vpop.eup %2195 }
 0x4a0   : > { %v1521_v7 = vmul.f32 %v2196_v4, %v2188_v43  ;;  %v1330_v8 = vld [vmem:[#allocation7] sm:$0xff] }
 0x4a1   : > { %v1331_v10 = vpack.c.bf16 %v1330_v8, %v1330_v8  ;;  %1406 = vst.msk [vmem:[#allocation7] sm:$0x3] %vm818_vm2, %v1405_v9  ;;  %1424 = vst.msk [vmem:[#allocation7 + $0x2] sm:$0x3] %vm818_vm2, %v1422_v63 }
 0x4a2   : > { %1442 = vst.msk [vmem:[#allocation7 + $0x4] sm:$0x3] %vm818_vm2, %v1440_v3  ;;  %1460 = vst.msk [vmem:[#allocation7 + $0x6] sm:$0x3] %vm818_vm2, %v1458_v5  ;;  %v1522_v16 = vpack.c.bf16 %v1521_v7, %v1521_v7 }
 0x4a3   : > { %1947 = vst.msk [vmem:[%s3016_s1 + $0x18] sm:$0xff] %vm882_vm3, %v1521_v7  ;;  %v1336_v11 = vsel %vm946_vm4, %v1331_v10, 0  ;;  %s2379_s1 = scalar_lea.vmem %s2378_s23, 1024 }
 0x4a4   : > { %2045 = vmatpush3.bf16.msra.mxu0 %v1336_v11 }
 0x4a5   : > { %2056 = vmatprep.subr.bf16.mxu0 %v2493_v0 }
 0x4a7   : > { %2047 = vmatmul.mubr.msk.bf16.vlgmr.msra.gmra.mrb[16].mxu0 %vm882_vm3, %v1329_v12 }
 0x4a8   : > { %2058 = vmatprep.mubr.msk.bf16.mxu0 %vm2494_vm0, %v2493_v0 }
 0x4a9   : > { %v1523_v13 = vld [vmem:[#allocation7] sm:$0xff] }
 0x4aa   : > { %v1524_v14 = vpack.c.bf16 %v1523_v13, %v1523_v13 }
 0x4ac   : > { %v1529_v15 = vsel %vm946_vm4, %v1524_v14, 0 }
 0x4ad   : > { %2057 = vmatpush3.bf16.msra.mxu0 %v1529_v15 }
 0x4b0   : > { %2059 = vmatmul.mubr.msk.bf16.vlgmr.msra.gmra.mrb[20].mxu0 %vm882_vm3, %v1522_v16 }
 0x52a   : > { %v984_v17 = vpop.f32.mrb[8].mxu0 }
 0x52b   : > { %990 = vst.msk [vmem:[#allocation8] sm:$0xff] %vm882_vm3, %v984_v17  ;;  %v2024_v18 = vpop.f32.mrb[9].mxu0 }
 0x52c   : > { %v987_v19 = vpop.f32.mrb[10].mxu0 }
 0x52d   : > { %v2025_v20 = vpop.f32.mrb[11].mxu0 }
 0x532   : > { %v991_v21 = vld [vmem:[#allocation8] sm:$0x3]  ;;  %v993_v22 = vld [vmem:[#allocation8 + $0x2] sm:$0x3]  ;;  %v1000_v24 = vld [vmem:[#allocation8 + $0x4] sm:$0x3] }
 0x533   : > { %992 = vst.msk [vmem:[#allocation9] sm:$0x3] %vm818_vm2, %v991_v21  ;;  %995 = vrot.lane.b32.xlu0 %v993_v22, %s2498_s9  ;;  %v1007_v25 = vld [vmem:[#allocation8 + $0x6] sm:$0x3] }
 0x536   : > { %v1179_v23 = vpop.f32.mrb[12].mxu0 }
 0x537   : > { %1002 = vrot.lane.b32.xlu0 %v1000_v24, %s2499_s20  ;;  %v2036_v26 = vpop.f32.mrb[13].mxu0  ;;  %1185 = vst.msk [vmem:[#allocation8] sm:$0xff] %vm882_vm3, %v1179_v23 }
 0x538   : > { %v1182_v27 = vpop.f32.mrb[14].mxu0 }
 0x539   : > { %v2037_v28 = vpop.f32.mrb[15].mxu0 }
 0x53b   : > { %1009 = vrot.lane.b32.xlu0 %v1007_v25, %s2500_s21 }
 0x53e   : > { %v1186_v29 = vld [vmem:[#allocation8] sm:$0x3]  ;;  %v1188_v30 = vld [vmem:[#allocation8 + $0x2] sm:$0x3]  ;;  %v1194_v31 = vld [vmem:[#allocation8 + $0x4] sm:$0x3] }
 0x53f   : > { %1187 = vst.msk [vmem:[#allocation9 + $0x2] sm:$0x3] %vm818_vm2, %v1186_v29  ;;  %1190 = vrot.lane.b32.xlu1 %v1188_v30, %s2498_s9  ;;  %v1200_v32 = vld [vmem:[#allocation8 + $0x6] sm:$0x3] }
 0x543   : > { %1196 = vrot.lane.b32.xlu1 %v1194_v31, %s2499_s20 }
 0x547   : > { %1202 = vrot.lane.b32.xlu1 %v1200_v32, %s2500_s21 }
 0x57a   : > { %v1372_v33 = vpop.f32.mrb[16].mxu0 }
 0x57b   : > { %1378 = vst.msk [vmem:[#allocation8] sm:$0xff] %vm882_vm3, %v1372_v33  ;;  %v2048_v34 = vpop.f32.mrb[17].mxu0 }
 0x57c   : > { %v1375_v35 = vpop.f32.mrb[18].mxu0 }
 0x57d   : > { %v2049_v36 = vpop.f32.mrb[19].mxu0 }
 0x582   : > { %v1379_v37 = vld [vmem:[#allocation8] sm:$0x3]  ;;  %v1381_v39 = vld [vmem:[#allocation8 + $0x2] sm:$0x3]  ;;  %v1387_v41 = vld [vmem:[#allocation8 + $0x4] sm:$0x3] }
 0x583   : > { %v1565_v38 = vpop.f32.mrb[20].mxu0  ;;  %1380 = vst.msk [vmem:[#allocation9 + $0x4] sm:$0x3] %vm818_vm2, %v1379_v37  ;;  %1383 = vrot.lane.b32.xlu0 %v1381_v39, %s2498_s9  ;;  %v1393_v42 = vld [vmem:[#allocation8 + $0x6] sm:$0x3] }
 0x584   : > { %v2060_v40 = vpop.f32.mrb[21].mxu0  ;;  %1571 = vst.msk [vmem:[#allocation8] sm:$0xff] %vm882_vm3, %v1565_v38 }
 0x585   : > { %v1568_v43 = vpop.f32.mrb[22].mxu0 }
 0x586   : > { %v2061_v44 = vpop.f32.mrb[23].mxu0 }
 0x587   : > { %1389 = vrot.lane.b32.xlu0 %v1387_v41, %s2499_s20 }
 0x58b   : > { %1395 = vrot.lane.b32.xlu0 %v1393_v42, %s2500_s21  ;;  %v1574_v47 = vld [vmem:[#allocation8 + $0x2] sm:$0x3]  ;;  %v1572_v48 = vld [vmem:[#allocation8] sm:$0x3]  ;;  %v1580_v49 = vld [vmem:[#allocation8 + $0x4] sm:$0x3] }
 0x58c   : > { %1576 = vrot.lane.b32.xlu1 %v1574_v47, %s2498_s9  ;;  %1573 = vst.msk [vmem:[#allocation9 + $0x6] sm:$0x3] %vm818_vm2, %v1572_v48  ;;  %v1586_v50 = vld [vmem:[#allocation8 + $0x6] sm:$0x3] }
 0x590   : > { %1582 = vrot.lane.b32.xlu1 %v1580_v49, %s2499_s20  ;;  %s1701_s20 = scalar_lea.sflag [#allocation23], %s2836_s18 }
 0x594   : > { %1588 = vrot.lane.b32.xlu1 %v1586_v50, %s2500_s21  ;;  %s2373_s21 = scalar_lea.vmem %s3101_s10, 512 }
 0x595   : > { %p2374_p10 = scmp.ne.s32.totalorder %s3101_s10, %s2373_s21  ;;  %p2381_p7 = scmp.lt.s32.totalorder %s2379_s1, %s2373_s21 }
 0x597   : > { %p2375_p4 = pnand %p2374_p10, %p3270_p0  ;;  %p2382_p3 = por %p2381_p7, %p2380_p13 }
 0x599   : > { %p2376_p9 = pneg %p2375_p4 }
 0x59b   : > { %p2383_p5 = pnand %p2382_p3, %p2376_p9 }
 0x5a5   : > { %v996_v51 = vpop.permute.xlu0 %995 }
 0x5a6   : > { %999 = vst.msk [vmem:[#allocation9] sm:$0x3] %vm998_vm5, %v996_v51 }
 0x5a9   : > { %v1003_v0 = vpop.permute.xlu0 %1002 }
 0x5aa   : > { %1006 = vst.msk [vmem:[#allocation9] sm:$0x3] %vm1005_vm6, %v1003_v0 }
 0x5ad   : > { %v1010_v52 = vpop.permute.xlu0 %1009 }
 0x5ae   : > { %1013 = vst.msk [vmem:[#allocation9] sm:$0x3] %vm1012_vm7, %v1010_v52 }
 0x5b1   : > { %v1191_v53 = vpop.permute.xlu1 %1190 }
 0x5b2   : > { %1193 = vst.msk [vmem:[#allocation9 + $0x2] sm:$0x3] %vm998_vm5, %v1191_v53 }
 0x5b5   : > { %v1197_v54 = vpop.permute.xlu1 %1196 }
 0x5b6   : > { %1199 = vst.msk [vmem:[#allocation9 + $0x2] sm:$0x3] %vm1005_vm6, %v1197_v54 }
 0x5b9   : > { %v1203_v55 = vpop.permute.xlu1 %1202 }
 0x5ba   : > { %1205 = vst.msk [vmem:[#allocation9 + $0x2] sm:$0x3] %vm1012_vm7, %v1203_v55 }
 0x5f5   : > { %v1384_v56 = vpop.permute.xlu0 %1383 }
 0x5f6   : > { %1386 = vst.msk [vmem:[#allocation9 + $0x4] sm:$0x3] %vm998_vm5, %v1384_v56 }
 0x5f9   : > { %v1390_v57 = vpop.permute.xlu0 %1389 }
 0x5fa   : > { %1392 = vst.msk [vmem:[#allocation9 + $0x4] sm:$0x3] %vm1005_vm6, %v1390_v57 }
 0x5fd   : > { %v1396_v58 = vpop.permute.xlu0 %1395 }
 0x5fe   : > { %1398 = vst.msk [vmem:[#allocation9 + $0x4] sm:$0x3] %vm1012_vm7, %v1396_v58  ;;  %v1577_v59 = vpop.permute.xlu1 %1576 }
 0x5ff   : > { %1579 = vst.msk [vmem:[#allocation9 + $0x6] sm:$0x3] %vm998_vm5, %v1577_v59 }
 0x602   : > { %v1583_v60 = vpop.permute.xlu1 %1582 }
 0x603   : > { %1585 = vst.msk [vmem:[#allocation9 + $0x6] sm:$0x3] %vm1005_vm6, %v1583_v60 }
 0x606   : > { %v1589_v61 = vpop.permute.xlu1 %1588 }
 0x607   : > { %1591 = vst.msk [vmem:[#allocation9 + $0x6] sm:$0x3] %vm1012_vm7, %v1589_v61 }
 0x60e   : > { %v1594_v62 = vld [vmem:[#allocation9] sm:$0xff] }
 0x60f   : > { %v1595_v63 = vpack.c.bf16 %v1594_v62, %v1594_v62 }
 0x611   : > { %2067 = vmatmul.mubr.msk.bf16.vlgmr.msra.gmra.mrb[20].mxu1 %vm634_vm1, %v1595_v63 }
 0x6e4   : > { %v1656_v2 = vpop.f32.mrb[20].mxu1 }
 0x6e5   : > { %v1657_v3 = vadd.f32 %v1948_v1, %v1656_v2  ;;  %v2068_v4 = vpop.f32.mrb[21].mxu1 }
 0x6e6   : > { %v1659_v5 = vpop.f32.mrb[22].mxu1 }
 0x6e7   : > { %v1662_v7 = vadd.f32 %v1657_v3, %v2870_v6  ;;  %v2069_v8 = vpop.f32.mrb[23].mxu1 }
 0x6e9   : > { %v1663_v9 = vsel %vm634_vm1, %v1662_v7, 0.0  ;;  %v1667_v10 = vmul.f32 %v1662_v7, %v1662_v7 }
 0x6ea   : > { %1664 = vadd.xlane.f32.xlu0 %v1663_v9 }
 0x6eb   : > { %v1668_v11 = vsel %vm634_vm1, %v1667_v10, 0.0 }
 0x6ec   : > { %1669 = vadd.xlane.f32.xlu1 %v1668_v11 }
 0x6ed   : > { %2386 = shalt.err (!%p2383_p5)
}
 0x6ee   : > { %s2387_s19 = scalar_lea.hbm %s3099_s24, 512  ;;  %s2391_s22 = scalar_lea.hbm %s3269_s3, 1024 }
 0x6ef   : > { %p2388_p2 = scmp.ne.s32.totalorder %s3099_s24, %s2387_s19  ;;  %p2392_p12 = scmp.lt.u32.totalorder %s3099_s24, %s3269_s3 }
 0x6f0   : > { %p2393_p1 = scmp.lt.u32.totalorder %s2391_s22, %s2387_s19  ;;  %p2395_p10 = scmp.lt.u32.totalorder %s2387_s19, %s3099_s24 }
 0x6f1   : > { %p2389_p8 = pnand %p2388_p2, %p3270_p0 }
 0x6f2   : > { %p2394_p6 = por %p2393_p1, %p2392_p12 }
 0x6f3   : > { %p2390_p11 = pneg %p2389_p8 }
 0x6f4   : > { %p2396_p4 = por %p2395_p10, %p2394_p6 }
 0x6f6   : > { %p2397_p9 = pnand %p2396_p4, %p2390_p11 }
 0x6f8   : > { %2400 = shalt.err (!%p2397_p9)
}
 0x6f9   : > { %s2502_s28 = smov 128   ;;  %s3271_s29 = sld [smem:[#allocation41_spill]] }
 0x6fa   : > { %2089 = dma.vmem_to_hbm [thread:$0]  (%p3270_p0), %s3101_s10, 512, %s3099_s24, %s1701_s20, %s2502_s28, %s2502_s28, %s2498_s9  }
 0x6fb   : > { %s3272_s9 = sld [smem:[#allocation42_spill]]  ;;  %s1956_s10 = sshll.u32 %s2600_s17, 7 }
 0x6fc   : > { %s599_s24 = scalar_lea.vmem [#allocation21], %s2839_s25  ;;  %s3273_s12 = sld [smem:[#allocation43_spill]] }
 0x6fd   : > { %s1714_s20 = sshll.u32 %s599_s24, 4  ;;  %s1696_s11 = scalar_lea.sflag [#allocation12], %s2836_s18  ;;  %s3141_s20 = int_to_ptr.vmem [resolvable:$true] %s1714_s20 }
 0x6fe   : > { %s2401_s16 = scalar_lea.vmem %s3141_s20, 128  ;;  %s2503_s17 = smov [#allocation21]  }
 0x6ff   : > { %v1952_v20 = vld [vmem:[%s3271_s29] ss:$0 sm:$0xff]  ;;  %p2402_p13 = scmp.ne.s32.totalorder %s3141_s20, %s2401_s16  ;;  %s2405_s25 = sshll.u32 %s2503_s17, 4  ;;  %s2406_s25 = int_to_ptr.vmem [resolvable:$false] %s2405_s25 }
 0x700   : > { %s2407_s28 = scalar_lea.vmem %s2406_s25, 256  ;;  %p2408_p5 = scmp.lt.s32.totalorder %s3141_s20, %s2406_s25 }
 0x701   : > { %v1953_v22 = vld [vmem:[%s3272_s9] ss:$0 sm:$0xff]  ;;  %p2403_p7 = pnand %p2402_p13, %p3270_p0  ;;  %p2409_p2 = scmp.lt.s32.totalorder %s2407_s28, %s2401_s16 }
 0x702   : > { %s3139_s22 = scalar_lea.hbm %s3273_s12, %s1956_s10 }
 0x703   : > { %p2404_p3 = pneg %p2403_p7  ;;  %p2410_p8 = por %p2409_p2, %p2408_p5 }
 0x705   : > { %p2411_p11 = pnand %p2410_p8, %p2404_p3 }
 0x777   : > { %v1665_v6 = vpop.xlane.xlu0 %1664 }
 0x778   : > { %v1666_v12 = vmul.f32 0.03125, %v1665_v6 }
 0x779   : > { %v1670_v13 = vpop.xlane.xlu1 %1669 }
 0x77a   : > { %v1672_v14 = vmul.f32 %v1666_v12, %v1666_v12  ;;  %v1671_v15 = vmul.f32 0.03125, %v1670_v13  ;;  %v1674_v18 = vsub.f32 %v1662_v7, %v1666_v12 }
 0x77c   : > { %v1673_v16 = vsub.f32 %v1671_v15, %v1672_v14 }
 0x77e   : > { %v1675_v17 = vadd.f32 1e-05, %v1673_v16 }
 0x780   : > { %2197 = vrsqrt.f32 %v1675_v17 }
 0x78a   : > { %v2198_v19 = vpop.eup %2197 }
 0x78b   : > { %v1677_v21 = vmul.f32 %v2198_v19, %v1674_v18 }
 0x78d   : > { %v1685_v23 = vmul.f32 %v1952_v20, %v1677_v21 }
 0x78f   : > { %v1693_v24 = vadd.f32 %v1953_v22, %v1685_v23 }
 0x791   : > { %1694 = vst.msk [vmem:[%s599_s24] sm:$0xff] %vm634_vm1, %v1693_v24 }
 0x792   : > { %2414 = shalt.err (!%p2411_p11)
}
 0x793   : > { %s2415_s18 = scalar_lea.hbm %s3139_s22, 128  ;;  %s2419_s29 = scalar_lea.hbm %s3273_s12, 256 }
 0x794   : > { %p2416_p12 = scmp.ne.s32.totalorder %s3139_s22, %s2415_s18  ;;  %p2420_p10 = scmp.lt.u32.totalorder %s3139_s22, %s3273_s12 }
 0x795   : > { %p2421_p4 = scmp.lt.u32.totalorder %s2419_s29, %s2415_s18  ;;  %p2423_p13 = scmp.lt.u32.totalorder %s2415_s18, %s3139_s22 }
 0x796   : > { %p2417_p1 = pnand %p2416_p12, %p3270_p0 }
 0x797   : > { %p2422_p9 = por %p2421_p4, %p2420_p10 }
 0x798   : > { %p2418_p6 = pneg %p2417_p1 }
 0x799   : > { %p2424_p7 = por %p2423_p13, %p2422_p9 }
 0x79b   : > { %p2425_p3 = pnand %p2424_p7, %p2418_p6 }
 0x79d   : > { %2428 = shalt.err (!%p2425_p3)
}
 0x79e   : > { %2088 = dma.vmem_to_hbm [thread:$0]  (%p3270_p0), %s3141_s20, 128, %s3139_s22, %s1696_s11  }
 0x79f PF: > { %s3274_s9 = sld [smem:[#allocation30_spill]]  ;;  %s3275_s10 = sld [smem:[#allocation32_spill]] }
 0x7a0   : > { %s3276_s24 = sld [smem:[#allocation31_spill]] }
 0x7a5   : > { %s1742_s19 = sand.u32 1, %s3274_s9   ;;  %p3277_p5 = scmp.ne.s32.totalorder %s3275_s10, 0 }
 0x7a6   : > { %p3278_p2 = scmp.ge.s32.totalorder %s3276_s24, 2  ;;  %s1743_s27 = scalar_lea.sflag [#allocation12], %s1742_s19 }
 0x7a8   : > { %p2113_p8 = pnand %p3278_p2, %p3277_p5 }
 0x7aa   : > { %2462 = dma.done.wait (!%p2113_p8), %s1743_s27, 128  }
 0x7ab   : > { %2464 = vsyncadd (!%p2113_p8), %s1743_s27, 4294967168  ;;  %s1752_s16 = scalar_lea.sflag [#allocation23], %s1742_s19 }
 0x7ac   : > { %2466 = dma.done.wait (!%p2113_p8), %s1752_s16, 512  }
 0x7ad   : > { %2468 = vsyncadd (!%p2113_p8), %s1752_s16, 4294966784  ;;  %s3279_s16 = sld [smem:[#allocation33_spill]]  ;;  %s3280_s5 = sld [smem:[#allocation34_spill]] }
 0x7ae   : > { %s3281_s29 = smov %s2475_s30  ;;  %s3282_s30 = smov %s2479_s15 }
 0x7b3   : > { %p36_p0 = scmp.ge.s32.totalorder %s3279_s16, 4   ;;  %s3283_s15 = smov %s3280_s5 }
 0x7b5   :  { %38 = sbr.rel (!%p36_p0) target bundleno = 21 (0x15), region = 173 }
 0x7bc   :  { %1757 = vsyncpa [#allocation11], 1 }
 0x7bd   :  { %1759 = vsyncpa [#allocation11 + $0x1], 1 }
 0x7be   :  { %1760 = vsyncpa [#allocation14], 1 }
 0x7bf   :  { %1762 = vsyncpa [#allocation14 + $0x1], 1 }
 0x7c0   :  { %1763 = vsyncpa [#allocation17], 1 }
 0x7c1   :  { %1764 = vsyncpa [#allocation20], 1 }
 0x7c2   :  { %1765 = vsyncpa [#allocation12], 1 }
 0x7c3   :  { %1767 = vsyncpa [#allocation12 + $0x1], 1 }
 0x7c4   :  { %1768 = vsyncpa [#allocation23], 1 }
 0x7c5   :  { %1770 = vsyncpa [#allocation23 + $0x1], 1 }

</bundles_post_ra>
